<compile_context>
chip_gen: v7x
topology: tpu7x:2x2x1
jax: 0.10.0
libtpu: 0.0.40
codegen_flags: <defaults>
</compile_context>

<pallas_src>
import math
import functools

import jax
import jax.numpy as jnp
from jax.experimental import pallas as pl
from jax.experimental.pallas import tpu as pltpu


# ----------------------------------------------------------------------------
# helpers
# ----------------------------------------------------------------------------

def _tile(dim, pref, align):
    """Largest tile <= pref that is a multiple of `align` and divides `dim`;
    small dims fall back to the full dim (always a legal block size)."""
    if dim <= pref:
        return dim
    t = (pref // align) * align
    while t >= align:
        if dim % t == 0:
            return t
        t -= align
    return dim


def _cparams(*sem):
    # explicit scoped-VMEM limit (tiles chosen to stay far below it, v7x-safe)
    return pltpu.CompilerParams(dimension_semantics=sem,
                                vmem_limit_bytes=32 * 1024 * 1024)


# ----------------------------------------------------------------------------
# Pallas kernels
# ----------------------------------------------------------------------------

def _linear_kernel(x_ref, w_ref, b_ref, o_ref, acc_ref):
    k = pl.program_id(2)

    @pl.when(k == 0)
    def _():
        acc_ref[...] = jnp.zeros_like(acc_ref)

    acc_ref[...] += jnp.dot(x_ref[...].astype(jnp.bfloat16), w_ref[...],
                            preferred_element_type=jnp.float32)

    @pl.when(k == pl.num_programs(2) - 1)
    def _():
        o_ref[...] = acc_ref[...] + b_ref[...]


def _linear_res_kernel(x_ref, w_ref, b_ref, r_ref, o_ref, acc_ref):
    # same as _linear_kernel but the residual add is fused into the epilogue
    k = pl.program_id(2)

    @pl.when(k == 0)
    def _():
        acc_ref[...] = jnp.zeros_like(acc_ref)

    acc_ref[...] += jnp.dot(x_ref[...].astype(jnp.bfloat16), w_ref[...],
                            preferred_element_type=jnp.float32)

    @pl.when(k == pl.num_programs(2) - 1)
    def _():
        o_ref[...] = acc_ref[...] + b_ref[...] + r_ref[...]


def _linear_specs(M, N, K):
    tm = _tile(M, 256, 8)
    tn = _tile(N, 256, 128)
    tk = _tile(K, 512, 128)
    grid = (M // tm, N // tn, K // tk)
    in_specs = [
        pl.BlockSpec((tm, tk), lambda i, j, k: (i, k)),
        pl.BlockSpec((tk, tn), lambda i, j, k: (k, j)),
        pl.BlockSpec((1, tn), lambda i, j, k: (0, j)),
    ]
    out_spec = pl.BlockSpec((tm, tn), lambda i, j, k: (i, j))
    scratch = [pltpu.VMEM((tm, tn), jnp.float32)]
    return grid, in_specs, out_spec, scratch


def linear(x2d, w, b):
    M, K = x2d.shape
    N = w.shape[1]
    grid, in_specs, out_spec, scratch = _linear_specs(M, N, K)
    return pl.pallas_call(
        _linear_kernel,
        grid=grid,
        in_specs=in_specs,
        out_specs=out_spec,
        out_shape=jax.ShapeDtypeStruct((M, N), jnp.float32),
        scratch_shapes=scratch,
        compiler_params=_cparams("parallel", "parallel", "arbitrary"),
    )(x2d, w, b)


def linear_residual(x2d, w, b, res2d):
    M, K = x2d.shape
    N = w.shape[1]
    grid, in_specs, out_spec, scratch = _linear_specs(M, N, K)
    tm, tn = out_spec.block_shape
    in_specs = in_specs + [pl.BlockSpec((tm, tn), lambda i, j, k: (i, j))]
    return pl.pallas_call(
        _linear_res_kernel,
        grid=grid,
        in_specs=in_specs,
        out_specs=out_spec,
        out_shape=jax.ShapeDtypeStruct((M, N), jnp.float32),
        scratch_shapes=scratch,
        compiler_params=_cparams("parallel", "parallel", "arbitrary"),
    )(x2d, w, b, res2d)


def _rms_linear_kernel(x_ref, g_ref, w_ref, b_ref, o_ref, *, eps):
    # fused RMSNorm prologue + matmul (full-K block: the norm needs whole rows)
    x = x_ref[...]                                         # (tm, D) f32
    ms = jnp.mean(x * x, axis=-1, keepdims=True)
    h = (g_ref[...] * (x * jax.lax.rsqrt(ms + eps))).astype(jnp.bfloat16)
    o_ref[...] = (jnp.dot(h, w_ref[...], preferred_element_type=jnp.float32)
                  + b_ref[...])


def rms_linear(x2d, g, w, b, eps=1e-6):
    M, K = x2d.shape
    N = w.shape[1]
    tm = _tile(M, 256, 8)
    tn = _tile(N, 512, 128)
    return pl.pallas_call(
        functools.partial(_rms_linear_kernel, eps=eps),
        grid=(M // tm, N // tn),
        in_specs=[
            pl.BlockSpec((tm, K), lambda i, j: (i, 0)),
            pl.BlockSpec((1, K), lambda i, j: (0, 0)),
            pl.BlockSpec((K, tn), lambda i, j: (0, j)),
            pl.BlockSpec((1, tn), lambda i, j: (0, j)),
        ],
        out_specs=pl.BlockSpec((tm, tn), lambda i, j: (i, j)),
        out_shape=jax.ShapeDtypeStruct((M, N), jnp.float32),
        compiler_params=_cparams("parallel", "parallel"),
    )(x2d, g, w, b)


def _rmsnorm_kernel(x_ref, g_ref, o_ref, *, eps):
    x = x_ref[...]
    ms = jnp.mean(x * x, axis=-1, keepdims=True)
    o_ref[...] = g_ref[...] * (x * jax.lax.rsqrt(ms + eps))


def rmsnorm(x2d, g, eps=1e-6):
    M, D = x2d.shape
    tm = _tile(M, 512, 8)
    return pl.pallas_call(
        functools.partial(_rmsnorm_kernel, eps=eps),
        grid=(M // tm,),
        in_specs=[
            pl.BlockSpec((tm, D), lambda i: (i, 0)),
            pl.BlockSpec((1, D), lambda i: (0, 0)),
        ],
        out_specs=pl.BlockSpec((tm, D), lambda i: (i, 0)),
        out_shape=jax.ShapeDtypeStruct((M, D), jnp.float32),
        compiler_params=_cparams("parallel"),
    )(x2d, g)


def _flash_kernel(q_ref, k_ref, v_ref, o_ref, m_sc, l_sc, acc_sc, *, scale):
    # flash-style online softmax; one (batch*head, q_tile) block resident,
    # kv axis is the innermost ("arbitrary") grid axis.
    ki = pl.program_id(2)

    @pl.when(ki == 0)
    def _():
        m_sc[...] = jnp.full_like(m_sc, -jnp.inf)
        l_sc[...] = jnp.zeros_like(l_sc)
        acc_sc[...] = jnp.zeros_like(acc_sc)

    # scale q (smaller than the score matrix), cast to bf16 for the MXU;
    # contract over the feature axis of an untransposed K (MXU "NT" matmul),
    # avoiding any HBM-side transpose of K.
    q = (q_ref[0] * scale).astype(jnp.bfloat16)
    s = jax.lax.dot_general(
        q, k_ref[0].astype(jnp.bfloat16),
        dimension_numbers=(((1,), (1,)), ((), ())),
        preferred_element_type=jnp.float32)                  # (tq, tkv) f32
    m_prev = m_sc[...]
    m_new = jnp.maximum(m_prev, jnp.max(s, axis=-1, keepdims=True))
    alpha = jnp.exp(m_prev - m_new)
    p = jnp.exp(s - m_new)
    l_sc[...] = alpha * l_sc[...] + jnp.sum(p, axis=-1, keepdims=True)
    acc_sc[...] = alpha * acc_sc[...] + jnp.dot(
        p.astype(jnp.bfloat16), v_ref[0].astype(jnp.bfloat16),
        preferred_element_type=jnp.float32)
    m_sc[...] = m_new

    @pl.when(ki == pl.num_programs(2) - 1)
    def _():
        o_ref[0] = acc_sc[...] * pl.reciprocal(l_sc[...], approx=True)


def attention(qf, kf, v, scale):
    # qf/kf: (B*H, S, Dq); v: (B*H, S, hd) -> (B*H, S, hd)
    BH, S, Dq = qf.shape
    hd = v.shape[-1]
    tq = _tile(S, 256, 8)
    tkv = _tile(S, 512, 128)
    return pl.pallas_call(
        functools.partial(_flash_kernel, scale=scale),
        grid=(BH, S // tq, S // tkv),
        in_specs=[
            pl.BlockSpec((1, tq, Dq), lambda b, qi, ki: (b, qi, 0)),
            pl.BlockSpec((1, tkv, Dq), lambda b, qi, ki: (b, ki, 0)),
            pl.BlockSpec((1, tkv, hd), lambda b, qi, ki: (b, ki, 0)),
        ],
        out_specs=pl.BlockSpec((1, tq, hd), lambda b, qi, ki: (b, qi, 0)),
        out_shape=jax.ShapeDtypeStruct((BH, S, hd), jnp.float32),
        scratch_shapes=[
            pltpu.VMEM((tq, 1), jnp.float32),
            pltpu.VMEM((tq, 1), jnp.float32),
            pltpu.VMEM((tq, hd), jnp.float32),
        ],
        compiler_params=_cparams("parallel", "parallel", "arbitrary"),
    )(qf, kf, v)


def _moe_kernel(h_ref, x_ref, w1_ref, b1_ref, w2_ref, b2_ref, g_ref, o_ref):
    # grid = (token_tile, expert, hid_tile); output block stays resident and
    # accumulates; both residual adds fused into the init.
    e = pl.program_id(1)
    hk = pl.program_id(2)

    @pl.when((e == 0) & (hk == 0))
    def _():
        # out = x + norm(x) + sum_e gate_e * expert_e(norm(x))
        o_ref[...] = x_ref[...] + h_ref[...]

    h16 = h_ref[...].astype(jnp.bfloat16)
    a = jnp.dot(h16, w1_ref[0], preferred_element_type=jnp.float32) + b1_ref[0]
    a = jnp.maximum(a, 0.0).astype(jnp.bfloat16)             # ReLU (per-column
    y = jnp.dot(a, w2_ref[0], preferred_element_type=jnp.float32)  # -> K-tileable)

    @pl.when(hk == 0)
    def _():
        # the gated b2 is added exactly once per (token_tile, expert)
        o_ref[...] += g_ref[0] * b2_ref[0]

    o_ref[...] += g_ref[0] * y                                # gated accumulate


def moe_experts(h2d, x2d, w1, b1, w2, b2, gate_e):
    # h2d: normed MoE input (T,D); x2d: pre-norm residual (T,D)
    # w1 (E,D,Hid) bf16; b1 (E,1,Hid); w2 (E,Hid,D) bf16; b2 (E,1,D);
    # gate_e (E,T,1) f32 (exact zeros off top-k; shared experts gate=1).
    T, D = h2d.shape
    E, _, Hid = w1.shape
    tt = _tile(T, 256, 8)
    th = _tile(Hid, 512, 128)
    return pl.pallas_call(
        _moe_kernel,
        grid=(T // tt, E, Hid // th),
        in_specs=[
            pl.BlockSpec((tt, D), lambda t, e, k: (t, 0)),
            pl.BlockSpec((tt, D), lambda t, e, k: (t, 0)),
            pl.BlockSpec((1, D, th), lambda t, e, k: (e, 0, k)),
            pl.BlockSpec((1, 1, th), lambda t, e, k: (e, 0, k)),
            pl.BlockSpec((1, th, D), lambda t, e, k: (e, k, 0)),
            pl.BlockSpec((1, 1, D), lambda t, e, k: (e, 0, 0)),
            pl.BlockSpec((1, tt, 1), lambda t, e, k: (e, t, 0)),
        ],
        out_specs=pl.BlockSpec((tt, D), lambda t, e, k: (t, 0)),
        out_shape=jax.ShapeDtypeStruct((T, D), jnp.float32),
        compiler_params=_cparams("parallel", "arbitrary", "arbitrary"),
    )(h2d, x2d, w1, b1, w2, b2, gate_e)


# ----------------------------------------------------------------------------
# JAX glue (rotary pair rearrangement / head reshapes / top-k routing)
# ----------------------------------------------------------------------------

def rotary(x, cos, sin):
    # x: (B,S,H,hd); cos/sin: (S, hd//2); interleaved (even,odd) pair rotation
    # matching torch.view_as_complex over reshape(..., -1, 2).
    B, S, H, hd = x.shape
    xr = x.reshape(B, S, H, hd // 2, 2)
    x0, x1 = xr[..., 0], xr[..., 1]
    c = cos[None, :, None, :]
    s = sin[None, :, None, :]
    return jnp.stack([x0 * c - x1 * s, x0 * s + x1 * c],
                     axis=-1).reshape(B, S, H, hd)


def mla_block(x, cos, sin, lp, cfg):
    # returns x + out_proj(attention(...))   (residual fused into out_proj)
    B, S, D = x.shape
    H = cfg["n_heads"]
    hd = D // H
    Lq = cfg["latent_q_dim"]
    Lkv = cfg["latent_kv_dim"]
    T = B * S
    xf = x.reshape(T, D)

    # fused RMSNorm + concatenated [cq | ckv | kr] projection (one kernel)
    front = rms_linear(xf, lp["rms1_w"], lp["w_front"], lp["b_front"])
    cq = front[:, :Lq]
    ckv = front[:, Lq:Lq + Lkv]
    kr = front[:, Lq + Lkv:]

    qqr = linear(cq, lp["w_qqr"], lp["b_qqr"])    # [q | qr]  (T, 2*H*hd)
    kv = linear(ckv, lp["w_kv"], lp["b_kv"])      # [k | v]   (T, 2*H*hd)
    q, qr = qqr[:, :H * hd], qqr[:, H * hd:]
    k, v = kv[:, :H * hd], kv[:, H * hd:]

    heads = lambda t: t.reshape(B, S, H, hd)
    q, qr, k, kr, v = map(heads, (q, qr, k, kr, v))
    qr = rotary(qr, cos, sin)
    # TODO(synk): reference applies rotary to raw `x` for the decoupled key,
    # which is shape-inconsistent (not runnable); rotary is applied to the
    # decoupled-key projection `kr` instead (intended MLA semantics).
    kr = rotary(kr, cos, sin)

    qf = jnp.concatenate([q, qr], axis=-1).transpose(0, 2, 1, 3)
    kf = jnp.concatenate([k, kr], axis=-1).transpose(0, 2, 1, 3)
    qf = qf.reshape(B * H, S, 2 * hd)
    kf = kf.reshape(B * H, S, 2 * hd)
    vh = v.transpose(0, 2, 1, 3).reshape(B * H, S, hd)

    attn = attention(qf, kf, vh, scale=1.0 / math.sqrt(hd))   # (B*H, S, hd)
    attn = attn.reshape(B, H, S, hd).transpose(0, 2, 1, 3).reshape(T, H * hd)
    return linear_residual(attn, lp["wo"], lp["bo"], xf).reshape(B, S, D)


def moe_block(x, lp, cfg):
    # returns x + (norm(x) + f_out)   (both residual adds fused in the kernel)
    B, S, D = x.shape
    T = B * S
    Er = cfg["n_r_experts"]
    Es = cfg["n_s_experts"]
    xf = x.reshape(T, D)
    h = rmsnorm(xf, lp["rms2_w"])                              # MoE expert input

    # NoisyTopKRouter: fused [route | noise] projection, f32 gating math.
    rlog = linear(h, lp["w_router"], lp["b_router"])           # (T, 2*Er)
    r_act, raw_noise = rlog[:, :Er], rlog[:, Er:]
    noisy = r_act + lp["noise"].reshape(T, Er) * jax.nn.softplus(raw_noise)
    _, topi = jax.lax.top_k(noisy, cfg["topk"])
    mask = jnp.any(topi[..., :, None] == jnp.arange(Er)[None, None, :], axis=-2)
    sparse = jnp.where(mask, noisy, -jnp.inf)
    gate = jax.nn.softmax(sparse, axis=-1)                     # exact 0 off top-k

    # routed experts use sparse gate; shared experts use gate 1.0
    gate_full = jnp.concatenate([gate, jnp.ones((T, Es), jnp.float32)], axis=-1)
    gate_e = jnp.transpose(gate_full)[:, :, None]              # (E, T, 1)

    # TODO(synk): dense all-expert compute with exact-zero gates; a routed
    # grouped-matmul (token bucketing + scalar-prefetch index_map) would cut
    # FLOPs/DMA by Er/topk at real expert counts.
    # TODO(synk): Expert Dropout(0.5) treated as identity (eval-mode).
    return moe_experts(h, xf, lp["w1"], lp["b1"], lp["w2"], lp["b2"],
                       gate_e).reshape(B, S, D)


def transformer_forward(token_ids, params, cfg):
    x = jnp.take(params["emb"], token_ids, axis=0)             # (B,S,D) f32
    cos, sin = params["cos"], params["sin"]
    for lp in params["layers"]:
        x = mla_block(x, cos, sin, lp, cfg)
        x = moe_block(x, lp, cfg)
    return x


# ----------------------------------------------------------------------------
# Deterministic parameter init (synthetic; shapes per the PyTorch __init__).
# Matmul weights stored bf16 (MXU-native); biases / norm weights / stats f32.
# ----------------------------------------------------------------------------

def init_params(key, cfg):
    D = cfg["n_embd"]
    H = cfg["n_heads"]
    hd = D // H
    Lq = cfg["latent_q_dim"]
    Lkv = cfg["latent_kv_dim"]
    Er = cfg["n_r_experts"]
    Es = cfg["n_s_experts"]
    E = Er + Es
    Hid = 4 * D
    S = cfg["seq_len"]
    B = cfg["batch"]
    bf = jnp.bfloat16

    def nrm(k, shape, scale=0.02, dtype=jnp.float32):
        return (scale * jax.random.normal(k, shape, dtype=jnp.float32)).astype(dtype)

    z = lambda n: jnp.zeros((1, n), jnp.float32)

    keys = iter(jax.random.split(key, 1 + cfg["n_layers"] * 24))
    params = {"emb": nrm(next(keys), (cfg["vocab_size"], D))}

    # precompute_theta_frequencies — exact formula (the reference omits the
    # usual /head_dim in the exponent; replicated as written).
    inv = 1.0 / (10000.0 ** jnp.arange(0, hd, 2, dtype=jnp.float32))
    freqs = jnp.outer(jnp.arange(S, dtype=jnp.float32), inv)
    params["cos"] = jnp.cos(freqs)
    params["sin"] = jnp.sin(freqs)

    layers = []
    for _ in range(cfg["n_layers"]):
        wq_lat = nrm(next(keys), (D, Lq))
        wkv_lat = nrm(next(keys), (D, Lkv))
        wq = nrm(next(keys), (Lq, H * hd))
        wqr = nrm(next(keys), (Lq, H * hd))
        bqr = nrm(next(keys), (1, H * hd))
        wk = nrm(next(keys), (Lkv, H * hd))
        wv = nrm(next(keys), (Lkv, H * hd))
        wkr = nrm(next(keys), (D, H * hd))
        bkr = nrm(next(keys), (1, H * hd))
        wo = nrm(next(keys), (H * hd, D))
        bo = nrm(next(keys), (1, D))
        wr = nrm(next(keys), (D, Er))
        br = nrm(next(keys), (1, Er))
        wn = nrm(next(keys), (D, Er))
        bn = nrm(next(keys), (1, Er))

        lp = {
            "rms1_w": jnp.ones((1, D), jnp.float32),
            "rms2_w": jnp.ones((1, D), jnp.float32),
            # fused MLA front-end: [latent_q | latent_kv | decop_rot_k]
            "w_front": jnp.concatenate([wq_lat, wkv_lat, wkr], axis=1).astype(bf),
            "b_front": jnp.concatenate([z(Lq), z(Lkv), bkr], axis=1),
            # fused second stage: [query | decop_rot_q] and [key | value]
            "w_qqr": jnp.concatenate([wq, wqr], axis=1).astype(bf),
            "b_qqr": jnp.concatenate([z(H * hd), bqr], axis=1),
            "w_kv": jnp.concatenate([wk, wv], axis=1).astype(bf),
            "b_kv": z(2 * H * hd),
            "wo": wo.astype(bf),
            "bo": bo,
            # fused router: [top_k_route | noise]
            "w_router": jnp.concatenate([wr, wn], axis=1).astype(bf),
            "b_router": jnp.concatenate([br, bn], axis=1),
            # Experts: routed (0..Er-1) then shared (Er..E-1)
            "w1": nrm(next(keys), (E, D, Hid), dtype=bf),
            "b1": nrm(next(keys), (E, 1, Hid)),
            "w2": nrm(next(keys), (E, Hid, D), dtype=bf),
            "b2": nrm(next(keys), (E, 1, D)),
            # deterministic stand-in for torch.randn_like router noise
            "noise": jax.random.normal(next(keys), (B, S, Er), jnp.float32),
        }
        layers.append(lp)
    params["layers"] = layers
    return params


# ----------------------------------------------------------------------------

if __name__ == "__main__":
    cfg = dict(
        batch=2,
        seq_len=8,
        n_embd=32,
        latent_kv_dim=16,
        latent_q_dim=16,
        n_heads=4,
        decop_rot_dim=8,    # must equal head_dim (= n_embd // n_heads)
        n_r_experts=4,
        n_s_experts=1,
        topk=2,
        n_layers=2,
        vocab_size=64,
    )
    key = jax.random.PRNGKey(0)
    pkey, tkey = jax.random.split(key)
    params = init_params(pkey, cfg)
    tokens = jax.random.randint(
        tkey, (cfg["batch"], cfg["seq_len"]), 0, cfg["vocab_size"], dtype=jnp.int32
    )

    @jax.jit
    def fwd(toks, prms):
        return transformer_forward(toks, prms, cfg)

    out = fwd(tokens, params)
    jax.block_until_ready(out)
    assert out.shape == (cfg["batch"], cfg["seq_len"], cfg["n_embd"])
    assert bool(jnp.all(jnp.isfinite(out)))
    print("KERNEL_OK")
</pallas_src>

<mosaic_0001>
module attributes {stable_mosaic.version = 11 : i64} {
  func.func @_linear_kernel(%arg0: i32, %arg1: i32, %arg2: i32, %arg3: memref<16x16xf32, #tpu.memory_space<vmem>>, %arg4: memref<16x64xbf16, #tpu.memory_space<vmem>>, %arg5: memref<1x64xf32, #tpu.memory_space<vmem>>, %arg6: memref<16x64xf32, #tpu.memory_space<vmem>>, %arg7: memref<16x64xf32, #tpu.memory_space<vmem>>) attributes {dimension_semantics = [#tpu.dimension_semantics<parallel>, #tpu.dimension_semantics<parallel>, #tpu.dimension_semantics<arbitrary>], iteration_bounds = array<i64: 1, 1, 1>, scalar_prefetch = 0 : i64, scratch_operands = 1 : i64, tpu.core_type = #tpu.core_type<tc>, window_params = [{transform_indices = @transform_0, window_bounds = array<i64: 16, 16>}, {transform_indices = @transform_1, window_bounds = array<i64: 16, 64>}, {transform_indices = @transform_2, window_bounds = array<i64: 1, 64>}, {transform_indices = @transform_3, window_bounds = array<i64: 16, 64>}]} {
    %c0_i32 = arith.constant 0 : i32
    %0 = arith.cmpi eq, %arg2, %c0_i32 : i32
    %1 = arith.extui %0 : i1 to i32
    %c0_i32_0 = arith.constant 0 : i32
    %2 = arith.cmpi ne, %1, %c0_i32_0 : i32
    scf.if %2 {
      %cst_10 = arith.constant 0.000000e+00 : f32
      %13 = vector.broadcast %cst_10 : f32 to vector<16x64xf32>
      %c0_11 = arith.constant 0 : index
      %c0_12 = arith.constant 0 : index
      %14 = vector.load %arg7[%c0_11, %c0_12] : memref<16x64xf32, #tpu.memory_space<vmem>>, vector<16x64xf32>
      tpu.vector_store %arg7[%c0_11, %c0_12], %13 {strides = array<i32>} : memref<16x64xf32, #tpu.memory_space<vmem>>, vector<16x64xf32>,
    } else {
    }
    %c0 = arith.constant 0 : index
    %c0_1 = arith.constant 0 : index
    %3 = vector.load %arg7[%c0, %c0_1] : memref<16x64xf32, #tpu.memory_space<vmem>>, vector<16x64xf32>
    %c0_2 = arith.constant 0 : index
    %c0_3 = arith.constant 0 : index
    %4 = vector.load %arg3[%c0_2, %c0_3] : memref<16x16xf32, #tpu.memory_space<vmem>>, vector<16x16xf32>
    %5 = arith.truncf %4 : vector<16x16xf32> to vector<16x16xbf16>
    %c0_4 = arith.constant 0 : index
    %c0_5 = arith.constant 0 : index
    %6 = vector.load %arg4[%c0_4, %c0_5] : memref<16x64xbf16, #tpu.memory_space<vmem>>, vector<16x64xbf16>
    %cst = arith.constant dense<0.000000e+00> : vector<16x64xf32>
    %7 = tpu.matmul %5, %6, %cst {dimension_numbers = #tpu.dot_dimension_numbers<[1], [0], [0], [1], [0, 0, 1, 1], [], []>} : vector<16x16xbf16>, vector<16x64xbf16>, vector<16x64xf32> -> vector<16x64xf32>
    %8 = arith.addf %3, %7 : vector<16x64xf32>
    %c0_6 = arith.constant 0 : index
    %c0_7 = arith.constant 0 : index
    %9 = vector.load %arg7[%c0_6, %c0_7] : memref<16x64xf32, #tpu.memory_space<vmem>>, vector<16x64xf32>
    tpu.vector_store %arg7[%c0_6, %c0_7], %8 {strides = array<i32>} : memref<16x64xf32, #tpu.memory_space<vmem>>, vector<16x64xf32>,
    %c0_i32_8 = arith.constant 0 : i32
    %10 = arith.cmpi eq, %arg2, %c0_i32_8 : i32
    %11 = arith.extui %10 : i1 to i32
    %c0_i32_9 = arith.constant 0 : i32
    %12 = arith.cmpi ne, %11, %c0_i32_9 : i32
    scf.if %12 {
      %c0_10 = arith.constant 0 : index
      %c0_11 = arith.constant 0 : index
      %13 = vector.load %arg7[%c0_10, %c0_11] : memref<16x64xf32, #tpu.memory_space<vmem>>, vector<16x64xf32>
      %c0_12 = arith.constant 0 : index
      %c0_13 = arith.constant 0 : index
      %14 = vector.load %arg5[%c0_12, %c0_13] : memref<1x64xf32, #tpu.memory_space<vmem>>, vector<1x64xf32>
      %15 = vector.broadcast %14 : vector<1x64xf32> to vector<16x64xf32>
      %16 = arith.addf %13, %15 : vector<16x64xf32>
      %c0_14 = arith.constant 0 : index
      %c0_15 = arith.constant 0 : index
      %17 = vector.load %arg6[%c0_14, %c0_15] : memref<16x64xf32, #tpu.memory_space<vmem>>, vector<16x64xf32>
      tpu.vector_store %arg6[%c0_14, %c0_15], %16 {strides = array<i32>} : memref<16x64xf32, #tpu.memory_space<vmem>>, vector<16x64xf32>,
    } else {
    }
    return
  }
  func.func @transform_0(%arg0: i32, %arg1: i32, %arg2: i32) -> (i32, i32) {
    %c0_i32 = arith.constant 0 : i32
    return %arg0, %arg2 : i32, i32
  }
  func.func @transform_1(%arg0: i32, %arg1: i32, %arg2: i32) -> (i32, i32) {
    %c0_i32 = arith.constant 0 : i32
    return %arg2, %arg1 : i32, i32
  }
  func.func @transform_2(%arg0: i32, %arg1: i32, %arg2: i32) -> (i32, i32) {
    %c0_i32 = arith.constant 0 : i32
    %c0_i32_0 = arith.constant 0 : i32
    return %c0_i32, %arg1 : i32, i32
  }
  func.func @transform_3(%arg0: i32, %arg1: i32, %arg2: i32) -> (i32, i32) {
    %c0_i32 = arith.constant 0 : i32
    return %arg0, %arg1 : i32, i32
  }
}

module attributes {stable_mosaic.version = 11 : i64} {
  func.func @_rms_linear_kernel(%arg0: i32, %arg1: i32, %arg2: memref<16x32xf32, #tpu.memory_space<vmem>>, %arg3: memref<1x32xf32, #tpu.memory_space<vmem>>, %arg4: memref<32x64xbf16, #tpu.memory_space<vmem>>, %arg5: memref<1x64xf32, #tpu.memory_space<vmem>>, %arg6: memref<16x64xf32, #tpu.memory_space<vmem>>) attributes {dimension_semantics = [#tpu.dimension_semantics<parallel>, #tpu.dimension_semantics<parallel>], iteration_bounds = array<i64: 1, 1>, scalar_prefetch = 0 : i64, scratch_operands = 0 : i64, tpu.core_type = #tpu.core_type<tc>, window_params = [{transform_indices = @transform_0, window_bounds = array<i64: 16, 32>}, {pipeline_mode = #tpu.pipeline_mode<synchronous>, transform_indices = @transform_1, window_bounds = array<i64: 1, 32>}, {transform_indices = @transform_2, window_bounds = array<i64: 32, 64>}, {transform_indices = @transform_3, window_bounds = array<i64: 1, 64>}, {transform_indices = @transform_4, window_bounds = array<i64: 16, 64>}]} {
    %c0 = arith.constant 0 : index
    %c0_0 = arith.constant 0 : index
    %0 = vector.load %arg2[%c0, %c0_0] : memref<16x32xf32, #tpu.memory_space<vmem>>, vector<16x32xf32>
    %1 = arith.mulf %0, %0 : vector<16x32xf32>
    %cst = arith.constant dense<0.000000e+00> : vector<16xf32>
    %2 = vector.multi_reduction <add>, %1, %cst [1] : vector<16x32xf32> to vector<16xf32>
    %3 = vector.shape_cast %2 : vector<16xf32> to vector<16x1xf32>
    %cst_1 = arith.constant 3.200000e+01 : f32
    %4 = vector.broadcast %cst_1 : f32 to vector<16x1xf32>
    %5 = arith.divf %3, %4 : vector<16x1xf32>
    %c0_2 = arith.constant 0 : index
    %c0_3 = arith.constant 0 : index
    %6 = vector.load %arg3[%c0_2, %c0_3] : memref<1x32xf32, #tpu.memory_space<vmem>>, vector<1x32xf32>
    %cst_4 = arith.constant 9.99999997E-7 : f32
    %7 = vector.broadcast %cst_4 : f32 to vector<16x1xf32>
    %8 = arith.addf %5, %7 : vector<16x1xf32>
    %9 = math.rsqrt %8 : vector<16x1xf32>
    %10 = vector.broadcast %9 : vector<16x1xf32> to vector<16x32xf32>
    %11 = arith.mulf %0, %10 : vector<16x32xf32>
    %12 = vector.broadcast %6 : vector<1x32xf32> to vector<16x32xf32>
    %13 = arith.mulf %12, %11 : vector<16x32xf32>
    %14 = arith.truncf %13 : vector<16x32xf32> to vector<16x32xbf16>
    %c0_5 = arith.constant 0 : index
    %c0_6 = arith.constant 0 : index
    %15 = vector.load %arg4[%c0_5, %c0_6] : memref<32x64xbf16, #tpu.memory_space<vmem>>, vector<32x64xbf16>
    %cst_7 = arith.constant dense<0.000000e+00> : vector<16x64xf32>
    %16 = tpu.matmul %14, %15, %cst_7 {dimension_numbers = #tpu.dot_dimension_numbers<[1], [0], [0], [1], [0, 0, 1, 1], [], []>} : vector<16x32xbf16>, vector<32x64xbf16>, vector<16x64xf32> -> vector<16x64xf32>
    %c0_8 = arith.constant 0 : index
    %c0_9 = arith.constant 0 : index
    %17 = vector.load %arg5[%c0_8, %c0_9] : memref<1x64xf32, #tpu.memory_space<vmem>>, vector<1x64xf32>
    %18 = vector.broadcast %17 : vector<1x64xf32> to vector<16x64xf32>
    %19 = arith.addf %16, %18 : vector<16x64xf32>
    %c0_10 = arith.constant 0 : index
    %c0_11 = arith.constant 0 : index
    %20 = vector.load %arg6[%c0_10, %c0_11] : memref<16x64xf32, #tpu.memory_space<vmem>>, vector<16x64xf32>
    tpu.vector_store %arg6[%c0_10, %c0_11], %19 {strides = array<i32>} : memref<16x64xf32, #tpu.memory_space<vmem>>, vector<16x64xf32>,
    return
  }
  func.func @transform_0(%arg0: i32, %arg1: i32) -> (i32, i32) {
    %c0_i32 = arith.constant 0 : i32
    %c0_i32_0 = arith.constant 0 : i32
    return %arg0, %c0_i32 : i32, i32
  }
  func.func @transform_1(%arg0: i32, %arg1: i32) -> (i32, i32) {
    %c0_i32 = arith.constant 0 : i32
    %c0_i32_0 = arith.constant 0 : i32
    %c0_i32_1 = arith.constant 0 : i32
    return %c0_i32, %c0_i32_0 : i32, i32
  }
  func.func @transform_2(%arg0: i32, %arg1: i32) -> (i32, i32) {
    %c0_i32 = arith.constant 0 : i32
    %c0_i32_0 = arith.constant 0 : i32
    return %c0_i32, %arg1 : i32, i32
  }
  func.func @transform_3(%arg0: i32, %arg1: i32) -> (i32, i32) {
    %c0_i32 = arith.constant 0 : i32
    %c0_i32_0 = arith.constant 0 : i32
    return %c0_i32, %arg1 : i32, i32
  }
  func.func @transform_4(%arg0: i32, %arg1: i32) -> (i32, i32) {
    %c0_i32 = arith.constant 0 : i32
    return %arg0, %arg1 : i32, i32
  }
}

module attributes {stable_mosaic.version = 11 : i64} {
  func.func @_flash_kernel(%arg0: i32, %arg1: i32, %arg2: i32, %arg3: memref<1x8x16xf32, #tpu.memory_space<vmem>>, %arg4: memref<1x8x16xf32, #tpu.memory_space<vmem>>, %arg5: memref<1x8x8xf32, #tpu.memory_space<vmem>>, %arg6: memref<1x8x8xf32, #tpu.memory_space<vmem>>, %arg7: memref<8x1xf32, #tpu.memory_space<vmem>>, %arg8: memref<8x1xf32, #tpu.memory_space<vmem>>, %arg9: memref<8x8xf32, #tpu.memory_space<vmem>>) attributes {dimension_semantics = [#tpu.dimension_semantics<parallel>, #tpu.dimension_semantics<parallel>, #tpu.dimension_semantics<arbitrary>], iteration_bounds = array<i64: 8, 1, 1>, scalar_prefetch = 0 : i64, scratch_operands = 3 : i64, tpu.core_type = #tpu.core_type<tc>, window_params = [{transform_indices = @transform_0, window_bounds = array<i64: 1, 8, 16>}, {transform_indices = @transform_1, window_bounds = array<i64: 1, 8, 16>}, {transform_indices = @transform_2, window_bounds = array<i64: 1, 8, 8>}, {transform_indices = @transform_3, window_bounds = array<i64: 1, 8, 8>}]} {
    %c0_i32 = arith.constant 0 : i32
    %0 = arith.cmpi eq, %arg2, %c0_i32 : i32
    %1 = arith.extui %0 : i1 to i32
    %c0_i32_0 = arith.constant 0 : i32
    %2 = arith.cmpi ne, %1, %c0_i32_0 : i32
    scf.if %2 {
      %cst_27 = arith.constant 0xFF800000 : f32
      %41 = vector.broadcast %cst_27 : f32 to vector<8x1xf32>
      %c0_28 = arith.constant 0 : index
      %c0_29 = arith.constant 0 : index
      %42 = vector.load %arg7[%c0_28, %c0_29] : memref<8x1xf32, #tpu.memory_space<vmem>>, vector<8x1xf32>
      tpu.vector_store %arg7[%c0_28, %c0_29], %41 {strides = array<i32>} : memref<8x1xf32, #tpu.memory_space<vmem>>, vector<8x1xf32>,
      %cst_30 = arith.constant 0.000000e+00 : f32
      %43 = vector.broadcast %cst_30 : f32 to vector<8x1xf32>
      %c0_31 = arith.constant 0 : index
      %c0_32 = arith.constant 0 : index
      %44 = vector.load %arg8[%c0_31, %c0_32] : memref<8x1xf32, #tpu.memory_space<vmem>>, vector<8x1xf32>
      tpu.vector_store %arg8[%c0_31, %c0_32], %43 {strides = array<i32>} : memref<8x1xf32, #tpu.memory_space<vmem>>, vector<8x1xf32>,
      %cst_33 = arith.constant 0.000000e+00 : f32
      %45 = vector.broadcast %cst_33 : f32 to vector<8x8xf32>
      %c0_34 = arith.constant 0 : index
      %c0_35 = arith.constant 0 : index
      %46 = vector.load %arg9[%c0_34, %c0_35] : memref<8x8xf32, #tpu.memory_space<vmem>>, vector<8x8xf32>
      tpu.vector_store %arg9[%c0_34, %c0_35], %45 {strides = array<i32>} : memref<8x8xf32, #tpu.memory_space<vmem>>, vector<8x8xf32>,
    } else {
    }
    %c0 = arith.constant 0 : index
    %c0_1 = arith.constant 0 : index
    %c0_2 = arith.constant 0 : index
    %3 = vector.load %arg3[%c0, %c0_1, %c0_2] : memref<1x8x16xf32, #tpu.memory_space<vmem>>, vector<1x8x16xf32>
    %4 = vector.shape_cast %3 : vector<1x8x16xf32> to vector<8x16xf32>
    %cst = arith.constant 0.353553385 : f32
    %5 = vector.broadcast %cst : f32 to vector<8x16xf32>
    %6 = arith.mulf %4, %5 : vector<8x16xf32>
    %7 = arith.truncf %6 : vector<8x16xf32> to vector<8x16xbf16>
    %c0_3 = arith.constant 0 : index
    %c0_4 = arith.constant 0 : index
    %c0_5 = arith.constant 0 : index
    %8 = vector.load %arg4[%c0_3, %c0_4, %c0_5] : memref<1x8x16xf32, #tpu.memory_space<vmem>>, vector<1x8x16xf32>
    %9 = vector.shape_cast %8 : vector<1x8x16xf32> to vector<8x16xf32>
    %10 = arith.truncf %9 : vector<8x16xf32> to vector<8x16xbf16>
    %cst_6 = arith.constant dense<0.000000e+00> : vector<8x8xf32>
    %11 = tpu.matmul %7, %10, %cst_6 {dimension_numbers = #tpu.dot_dimension_numbers<[1], [1], [0], [0], [0, 0, 1, 0], [], []>} : vector<8x16xbf16>, vector<8x16xbf16>, vector<8x8xf32> -> vector<8x8xf32>
    %c0_7 = arith.constant 0 : index
    %c0_8 = arith.constant 0 : index
    %12 = vector.load %arg7[%c0_7, %c0_8] : memref<8x1xf32, #tpu.memory_space<vmem>>, vector<8x1xf32>
    %cst_9 = arith.constant dense<0xFF800000> : vector<8xf32>
    %13 = vector.multi_reduction <maximumf>, %11, %cst_9 [1] : vector<8x8xf32> to vector<8xf32>
    %14 = vector.shape_cast %13 : vector<8xf32> to vector<8x1xf32>
    %15 = arith.maximumf %12, %14 : vector<8x1xf32>
    %16 = arith.subf %12, %15 : vector<8x1xf32>
    %17 = math.exp %16 : vector<8x1xf32>
    %18 = vector.broadcast %15 : vector<8x1xf32> to vector<8x8xf32>
    %19 = arith.subf %11, %18 : vector<8x8xf32>
    %20 = math.exp %19 : vector<8x8xf32>
    %c0_10 = arith.constant 0 : index
    %c0_11 = arith.constant 0 : index
    %21 = vector.load %arg8[%c0_10, %c0_11] : memref<8x1xf32, #tpu.memory_space<vmem>>, vector<8x1xf32>
    %22 = arith.mulf %17, %21 : vector<8x1xf32>
    %cst_12 = arith.constant dense<0.000000e+00> : vector<8xf32>
    %23 = vector.multi_reduction <add>, %20, %cst_12 [1] : vector<8x8xf32> to vector<8xf32>
    %24 = vector.shape_cast %23 : vector<8xf32> to vector<8x1xf32>
    %25 = arith.addf %22, %24 : vector<8x1xf32>
    %c0_13 = arith.constant 0 : index
    %c0_14 = arith.constant 0 : index
    %26 = vector.load %arg8[%c0_13, %c0_14] : memref<8x1xf32, #tpu.memory_space<vmem>>, vector<8x1xf32>
    tpu.vector_store %arg8[%c0_13, %c0_14], %25 {strides = array<i32>} : memref<8x1xf32, #tpu.memory_space<vmem>>, vector<8x1xf32>,
    %c0_15 = arith.constant 0 : index
    %c0_16 = arith.constant 0 : index
    %27 = vector.load %arg9[%c0_15, %c0_16] : memref<8x8xf32, #tpu.memory_space<vmem>>, vector<8x8xf32>
    %28 = vector.broadcast %17 : vector<8x1xf32> to vector<8x8xf32>
    %29 = arith.mulf %28, %27 : vector<8x8xf32>
    %30 = arith.truncf %20 : vector<8x8xf32> to vector<8x8xbf16>
    %c0_17 = arith.constant 0 : index
    %c0_18 = arith.constant 0 : index
    %c0_19 = arith.constant 0 : index
    %31 = vector.load %arg5[%c0_17, %c0_18, %c0_19] : memref<1x8x8xf32, #tpu.memory_space<vmem>>, vector<1x8x8xf32>
    %32 = vector.shape_cast %31 : vector<1x8x8xf32> to vector<8x8xf32>
    %33 = arith.truncf %32 : vector<8x8xf32> to vector<8x8xbf16>
    %cst_20 = arith.constant dense<0.000000e+00> : vector<8x8xf32>
    %34 = tpu.matmul %30, %33, %cst_20 {dimension_numbers = #tpu.dot_dimension_numbers<[1], [0], [0], [1], [0, 0, 1, 1], [], []>} : vector<8x8xbf16>, vector<8x8xbf16>, vector<8x8xf32> -> vector<8x8xf32>
    %35 = arith.addf %29, %34 : vector<8x8xf32>
    %c0_21 = arith.constant 0 : index
    %c0_22 = arith.constant 0 : index
    %36 = vector.load %arg9[%c0_21, %c0_22] : memref<8x8xf32, #tpu.memory_space<vmem>>, vector<8x8xf32>
    tpu.vector_store %arg9[%c0_21, %c0_22], %35 {strides = array<i32>} : memref<8x8xf32, #tpu.memory_space<vmem>>, vector<8x8xf32>,
    %c0_23 = arith.constant 0 : index
    %c0_24 = arith.constant 0 : index
    %37 = vector.load %arg7[%c0_23, %c0_24] : memref<8x1xf32, #tpu.memory_space<vmem>>, vector<8x1xf32>
    tpu.vector_store %arg7[%c0_23, %c0_24], %15 {strides = array<i32>} : memref<8x1xf32, #tpu.memory_space<vmem>>, vector<8x1xf32>,
    %c0_i32_25 = arith.constant 0 : i32
    %38 = arith.cmpi eq, %arg2, %c0_i32_25 : i32
    %39 = arith.extui %38 : i1 to i32
    %c0_i32_26 = arith.constant 0 : i32
    %40 = arith.cmpi ne, %39, %c0_i32_26 : i32
    scf.if %40 {
      %c0_27 = arith.constant 0 : index
      %c0_28 = arith.constant 0 : index
      %41 = vector.load %arg9[%c0_27, %c0_28] : memref<8x8xf32, #tpu.memory_space<vmem>>, vector<8x8xf32>
      %c0_29 = arith.constant 0 : index
      %c0_30 = arith.constant 0 : index
      %42 = vector.load %arg8[%c0_29, %c0_30] : memref<8x1xf32, #tpu.memory_space<vmem>>, vector<8x1xf32>
      %43 = tpu.reciprocal %42 {approx = true} : vector<8x1xf32> -> vector<8x1xf32>
      %44 = vector.broadcast %43 : vector<8x1xf32> to vector<8x8xf32>
      %45 = arith.mulf %41, %44 : vector<8x8xf32>
      %c0_31 = arith.constant 0 : index
      %c0_32 = arith.constant 0 : index
      %c0_33 = arith.constant 0 : index
      %46 = vector.load %arg6[%c0_31, %c0_32, %c0_33] : memref<1x8x8xf32, #tpu.memory_space<vmem>>, vector<1x8x8xf32>
      %47 = vector.shape_cast %46 : vector<1x8x8xf32> to vector<8x8xf32>
      %48 = vector.shape_cast %45 : vector<8x8xf32> to vector<1x8x8xf32>
      tpu.vector_store %arg6[%c0_31, %c0_32, %c0_33], %48 {strides = array<i32>} : memref<1x8x8xf32, #tpu.memory_space<vmem>>, vector<1x8x8xf32>,
    } else {
    }
    return
  }
  func.func @transform_0(%arg0: i32, %arg1: i32, %arg2: i32) -> (i32, i32, i32) {
    %c0_i32 = arith.constant 0 : i32
    %c0_i32_0 = arith.constant 0 : i32
    return %arg0, %arg1, %c0_i32 : i32, i32, i32
  }
  func.func @transform_1(%arg0: i32, %arg1: i32, %arg2: i32) -> (i32, i32, i32) {
    %c0_i32 = arith.constant 0 : i32
    %c0_i32_0 = arith.constant 0 : i32
    return %arg0, %arg2, %c0_i32 : i32, i32, i32
  }
  func.func @transform_2(%arg0: i32, %arg1: i32, %arg2: i32) -> (i32, i32, i32) {
    %c0_i32 = arith.constant 0 : i32
    %c0_i32_0 = arith.constant 0 : i32
    return %arg0, %arg2, %c0_i32 : i32, i32, i32
  }
  func.func @transform_3(%arg0: i32, %arg1: i32, %arg2: i32) -> (i32, i32, i32) {
    %c0_i32 = arith.constant 0 : i32
    %c0_i32_0 = arith.constant 0 : i32
    return %arg0, %arg1, %c0_i32 : i32, i32, i32
  }
}

module attributes {stable_mosaic.version = 11 : i64} {
  func.func @_rmsnorm_kernel(%arg0: i32, %arg1: memref<16x32xf32, #tpu.memory_space<vmem>>, %arg2: memref<1x32xf32, #tpu.memory_space<vmem>>, %arg3: memref<16x32xf32, #tpu.memory_space<vmem>>) attributes {dimension_semantics = [#tpu.dimension_semantics<parallel>], iteration_bounds = array<i64: 1>, scalar_prefetch = 0 : i64, scratch_operands = 0 : i64, tpu.core_type = #tpu.core_type<tc>, window_params = [{transform_indices = @transform_0, window_bounds = array<i64: 16, 32>}, {pipeline_mode = #tpu.pipeline_mode<synchronous>, transform_indices = @transform_1, window_bounds = array<i64: 1, 32>}, {transform_indices = @transform_2, window_bounds = array<i64: 16, 32>}]} {
    %c0 = arith.constant 0 : index
    %c0_0 = arith.constant 0 : index
    %0 = vector.load %arg1[%c0, %c0_0] : memref<16x32xf32, #tpu.memory_space<vmem>>, vector<16x32xf32>
    %1 = arith.mulf %0, %0 : vector<16x32xf32>
    %cst = arith.constant dense<0.000000e+00> : vector<16xf32>
    %2 = vector.multi_reduction <add>, %1, %cst [1] : vector<16x32xf32> to vector<16xf32>
    %3 = vector.shape_cast %2 : vector<16xf32> to vector<16x1xf32>
    %cst_1 = arith.constant 3.200000e+01 : f32
    %4 = vector.broadcast %cst_1 : f32 to vector<16x1xf32>
    %5 = arith.divf %3, %4 : vector<16x1xf32>
    %c0_2 = arith.constant 0 : index
    %c0_3 = arith.constant 0 : index
    %6 = vector.load %arg2[%c0_2, %c0_3] : memref<1x32xf32, #tpu.memory_space<vmem>>, vector<1x32xf32>
    %cst_4 = arith.constant 9.99999997E-7 : f32
    %7 = vector.broadcast %cst_4 : f32 to vector<16x1xf32>
    %8 = arith.addf %5, %7 : vector<16x1xf32>
    %9 = math.rsqrt %8 : vector<16x1xf32>
    %10 = vector.broadcast %9 : vector<16x1xf32> to vector<16x32xf32>
    %11 = arith.mulf %0, %10 : vector<16x32xf32>
    %12 = vector.broadcast %6 : vector<1x32xf32> to vector<16x32xf32>
    %13 = arith.mulf %12, %11 : vector<16x32xf32>
    %c0_5 = arith.constant 0 : index
    %c0_6 = arith.constant 0 : index
    %14 = vector.load %arg3[%c0_5, %c0_6] : memref<16x32xf32, #tpu.memory_space<vmem>>, vector<16x32xf32>
    tpu.vector_store %arg3[%c0_5, %c0_6], %13 {strides = array<i32>} : memref<16x32xf32, #tpu.memory_space<vmem>>, vector<16x32xf32>,
    return
  }
  func.func @transform_0(%arg0: i32) -> (i32, i32) {
    %c0_i32 = arith.constant 0 : i32
    %c0_i32_0 = arith.constant 0 : i32
    return %arg0, %c0_i32 : i32, i32
  }
  func.func @transform_1(%arg0: i32) -> (i32, i32) {
    %c0_i32 = arith.constant 0 : i32
    %c0_i32_0 = arith.constant 0 : i32
    %c0_i32_1 = arith.constant 0 : i32
    return %c0_i32, %c0_i32_0 : i32, i32
  }
  func.func @transform_2(%arg0: i32) -> (i32, i32) {
    %c0_i32 = arith.constant 0 : i32
    %c0_i32_0 = arith.constant 0 : i32
    return %arg0, %c0_i32 : i32, i32
  }
}

module attributes {stable_mosaic.version = 11 : i64} {
  func.func @_linear_res_kernel(%arg0: i32, %arg1: i32, %arg2: i32, %arg3: memref<16x32xf32, #tpu.memory_space<vmem>>, %arg4: memref<32x32xbf16, #tpu.memory_space<vmem>>, %arg5: memref<1x32xf32, #tpu.memory_space<vmem>>, %arg6: memref<16x32xf32, #tpu.memory_space<vmem>>, %arg7: memref<16x32xf32, #tpu.memory_space<vmem>>, %arg8: memref<16x32xf32, #tpu.memory_space<vmem>>) attributes {dimension_semantics = [#tpu.dimension_semantics<parallel>, #tpu.dimension_semantics<parallel>, #tpu.dimension_semantics<arbitrary>], iteration_bounds = array<i64: 1, 1, 1>, scalar_prefetch = 0 : i64, scratch_operands = 1 : i64, tpu.core_type = #tpu.core_type<tc>, window_params = [{transform_indices = @transform_0, window_bounds = array<i64: 16, 32>}, {transform_indices = @transform_1, window_bounds = array<i64: 32, 32>}, {transform_indices = @transform_2, window_bounds = array<i64: 1, 32>}, {transform_indices = @transform_3, window_bounds = array<i64: 16, 32>}, {transform_indices = @transform_4, window_bounds = array<i64: 16, 32>}]} {
    %c0_i32 = arith.constant 0 : i32
    %0 = arith.cmpi eq, %arg2, %c0_i32 : i32
    %1 = arith.extui %0 : i1 to i32
    %c0_i32_0 = arith.constant 0 : i32
    %2 = arith.cmpi ne, %1, %c0_i32_0 : i32
    scf.if %2 {
      %cst_10 = arith.constant 0.000000e+00 : f32
      %13 = vector.broadcast %cst_10 : f32 to vector<16x32xf32>
      %c0_11 = arith.constant 0 : index
      %c0_12 = arith.constant 0 : index
      %14 = vector.load %arg8[%c0_11, %c0_12] : memref<16x32xf32, #tpu.memory_space<vmem>>, vector<16x32xf32>
      tpu.vector_store %arg8[%c0_11, %c0_12], %13 {strides = array<i32>} : memref<16x32xf32, #tpu.memory_space<vmem>>, vector<16x32xf32>,
    } else {
    }
    %c0 = arith.constant 0 : index
    %c0_1 = arith.constant 0 : index
    %3 = vector.load %arg8[%c0, %c0_1] : memref<16x32xf32, #tpu.memory_space<vmem>>, vector<16x32xf32>
    %c0_2 = arith.constant 0 : index
    %c0_3 = arith.constant 0 : index
    %4 = vector.load %arg3[%c0_2, %c0_3] : memref<16x32xf32, #tpu.memory_space<vmem>>, vector<16x32xf32>
    %5 = arith.truncf %4 : vector<16x32xf32> to vector<16x32xbf16>
    %c0_4 = arith.constant 0 : index
    %c0_5 = arith.constant 0 : index
    %6 = vector.load %arg4[%c0_4, %c0_5] : memref<32x32xbf16, #tpu.memory_space<vmem>>, vector<32x32xbf16>
    %cst = arith.constant dense<0.000000e+00> : vector<16x32xf32>
    %7 = tpu.matmul %5, %6, %cst {dimension_numbers = #tpu.dot_dimension_numbers<[1], [0], [0], [1], [0, 0, 1, 1], [], []>} : vector<16x32xbf16>, vector<32x32xbf16>, vector<16x32xf32> -> vector<16x32xf32>
    %8 = arith.addf %3, %7 : vector<16x32xf32>
    %c0_6 = arith.constant 0 : index
    %c0_7 = arith.constant 0 : index
    %9 = vector.load %arg8[%c0_6, %c0_7] : memref<16x32xf32, #tpu.memory_space<vmem>>, vector<16x32xf32>
    tpu.vector_store %arg8[%c0_6, %c0_7], %8 {strides = array<i32>} : memref<16x32xf32, #tpu.memory_space<vmem>>, vector<16x32xf32>,
    %c0_i32_8 = arith.constant 0 : i32
    %10 = arith.cmpi eq, %arg2, %c0_i32_8 : i32
    %11 = arith.extui %10 : i1 to i32
    %c0_i32_9 = arith.constant 0 : i32
    %12 = arith.cmpi ne, %11, %c0_i32_9 : i32
    scf.if %12 {
      %c0_10 = arith.constant 0 : index
      %c0_11 = arith.constant 0 : index
      %13 = vector.load %arg8[%c0_10, %c0_11] : memref<16x32xf32, #tpu.memory_space<vmem>>, vector<16x32xf32>
      %c0_12 = arith.constant 0 : index
      %c0_13 = arith.constant 0 : index
      %14 = vector.load %arg5[%c0_12, %c0_13] : memref<1x32xf32, #tpu.memory_space<vmem>>, vector<1x32xf32>
      %15 = vector.broadcast %14 : vector<1x32xf32> to vector<16x32xf32>
      %16 = arith.addf %13, %15 : vector<16x32xf32>
      %c0_14 = arith.constant 0 : index
      %c0_15 = arith.constant 0 : index
      %17 = vector.load %arg6[%c0_14, %c0_15] : memref<16x32xf32, #tpu.memory_space<vmem>>, vector<16x32xf32>
      %18 = arith.addf %16, %17 : vector<16x32xf32>
      %c0_16 = arith.constant 0 : index
      %c0_17 = arith.constant 0 : index
      %19 = vector.load %arg7[%c0_16, %c0_17] : memref<16x32xf32, #tpu.memory_space<vmem>>, vector<16x32xf32>
      tpu.vector_store %arg7[%c0_16, %c0_17], %18 {strides = array<i32>} : memref<16x32xf32, #tpu.memory_space<vmem>>, vector<16x32xf32>,
    } else {
    }
    return
  }
  func.func @transform_0(%arg0: i32, %arg1: i32, %arg2: i32) -> (i32, i32) {
    %c0_i32 = arith.constant 0 : i32
    return %arg0, %arg2 : i32, i32
  }
  func.func @transform_1(%arg0: i32, %arg1: i32, %arg2: i32) -> (i32, i32) {
    %c0_i32 = arith.constant 0 : i32
    return %arg2, %arg1 : i32, i32
  }
  func.func @transform_2(%arg0: i32, %arg1: i32, %arg2: i32) -> (i32, i32) {
    %c0_i32 = arith.constant 0 : i32
    %c0_i32_0 = arith.constant 0 : i32
    return %c0_i32, %arg1 : i32, i32
  }
  func.func @transform_3(%arg0: i32, %arg1: i32, %arg2: i32) -> (i32, i32) {
    %c0_i32 = arith.constant 0 : i32
    return %arg0, %arg1 : i32, i32
  }
  func.func @transform_4(%arg0: i32, %arg1: i32, %arg2: i32) -> (i32, i32) {
    %c0_i32 = arith.constant 0 : i32
    return %arg0, %arg1 : i32, i32
  }
}

module attributes {stable_mosaic.version = 11 : i64} {
  func.func @_linear_kernel(%arg0: i32, %arg1: i32, %arg2: i32, %arg3: memref<16x32xf32, #tpu.memory_space<vmem>>, %arg4: memref<32x8xbf16, #tpu.memory_space<vmem>>, %arg5: memref<1x8xf32, #tpu.memory_space<vmem>>, %arg6: memref<16x8xf32, #tpu.memory_space<vmem>>, %arg7: memref<16x8xf32, #tpu.memory_space<vmem>>) attributes {dimension_semantics = [#tpu.dimension_semantics<parallel>, #tpu.dimension_semantics<parallel>, #tpu.dimension_semantics<arbitrary>], iteration_bounds = array<i64: 1, 1, 1>, scalar_prefetch = 0 : i64, scratch_operands = 1 : i64, tpu.core_type = #tpu.core_type<tc>, window_params = [{transform_indices = @transform_0, window_bounds = array<i64: 16, 32>}, {transform_indices = @transform_1, window_bounds = array<i64: 32, 8>}, {transform_indices = @transform_2, window_bounds = array<i64: 1, 8>}, {transform_indices = @transform_3, window_bounds = array<i64: 16, 8>}]} {
    %c0_i32 = arith.constant 0 : i32
    %0 = arith.cmpi eq, %arg2, %c0_i32 : i32
    %1 = arith.extui %0 : i1 to i32
    %c0_i32_0 = arith.constant 0 : i32
    %2 = arith.cmpi ne, %1, %c0_i32_0 : i32
    scf.if %2 {
      %cst_10 = arith.constant 0.000000e+00 : f32
      %13 = vector.broadcast %cst_10 : f32 to vector<16x8xf32>
      %c0_11 = arith.constant 0 : index
      %c0_12 = arith.constant 0 : index
      %14 = vector.load %arg7[%c0_11, %c0_12] : memref<16x8xf32, #tpu.memory_space<vmem>>, vector<16x8xf32>
      tpu.vector_store %arg7[%c0_11, %c0_12], %13 {strides = array<i32>} : memref<16x8xf32, #tpu.memory_space<vmem>>, vector<16x8xf32>,
    } else {
    }
    %c0 = arith.constant 0 : index
    %c0_1 = arith.constant 0 : index
    %3 = vector.load %arg7[%c0, %c0_1] : memref<16x8xf32, #tpu.memory_space<vmem>>, vector<16x8xf32>
    %c0_2 = arith.constant 0 : index
    %c0_3 = arith.constant 0 : index
    %4 = vector.load %arg3[%c0_2, %c0_3] : memref<16x32xf32, #tpu.memory_space<vmem>>, vector<16x32xf32>
    %5 = arith.truncf %4 : vector<16x32xf32> to vector<16x32xbf16>
    %c0_4 = arith.constant 0 : index
    %c0_5 = arith.constant 0 : index
    %6 = vector.load %arg4[%c0_4, %c0_5] : memref<32x8xbf16, #tpu.memory_space<vmem>>, vector<32x8xbf16>
    %cst = arith.constant dense<0.000000e+00> : vector<16x8xf32>
    %7 = tpu.matmul %5, %6, %cst {dimension_numbers = #tpu.dot_dimension_numbers<[1], [0], [0], [1], [0, 0, 1, 1], [], []>} : vector<16x32xbf16>, vector<32x8xbf16>, vector<16x8xf32> -> vector<16x8xf32>
    %8 = arith.addf %3, %7 : vector<16x8xf32>
    %c0_6 = arith.constant 0 : index
    %c0_7 = arith.constant 0 : index
    %9 = vector.load %arg7[%c0_6, %c0_7] : memref<16x8xf32, #tpu.memory_space<vmem>>, vector<16x8xf32>
    tpu.vector_store %arg7[%c0_6, %c0_7], %8 {strides = array<i32>} : memref<16x8xf32, #tpu.memory_space<vmem>>, vector<16x8xf32>,
    %c0_i32_8 = arith.constant 0 : i32
    %10 = arith.cmpi eq, %arg2, %c0_i32_8 : i32
    %11 = arith.extui %10 : i1 to i32
    %c0_i32_9 = arith.constant 0 : i32
    %12 = arith.cmpi ne, %11, %c0_i32_9 : i32
    scf.if %12 {
      %c0_10 = arith.constant 0 : index
      %c0_11 = arith.constant 0 : index
      %13 = vector.load %arg7[%c0_10, %c0_11] : memref<16x8xf32, #tpu.memory_space<vmem>>, vector<16x8xf32>
      %c0_12 = arith.constant 0 : index
      %c0_13 = arith.constant 0 : index
      %14 = vector.load %arg5[%c0_12, %c0_13] : memref<1x8xf32, #tpu.memory_space<vmem>>, vector<1x8xf32>
      %15 = vector.broadcast %14 : vector<1x8xf32> to vector<16x8xf32>
      %16 = arith.addf %13, %15 : vector<16x8xf32>
      %c0_14 = arith.constant 0 : index
      %c0_15 = arith.constant 0 : index
      %17 = vector.load %arg6[%c0_14, %c0_15] : memref<16x8xf32, #tpu.memory_space<vmem>>, vector<16x8xf32>
      tpu.vector_store %arg6[%c0_14, %c0_15], %16 {strides = array<i32>} : memref<16x8xf32, #tpu.memory_space<vmem>>, vector<16x8xf32>,
    } else {
    }
    return
  }
  func.func @transform_0(%arg0: i32, %arg1: i32, %arg2: i32) -> (i32, i32) {
    %c0_i32 = arith.constant 0 : i32
    return %arg0, %arg2 : i32, i32
  }
  func.func @transform_1(%arg0: i32, %arg1: i32, %arg2: i32) -> (i32, i32) {
    %c0_i32 = arith.constant 0 : i32
    return %arg2, %arg1 : i32, i32
  }
  func.func @transform_2(%arg0: i32, %arg1: i32, %arg2: i32) -> (i32, i32) {
    %c0_i32 = arith.constant 0 : i32
    %c0_i32_0 = arith.constant 0 : i32
    return %c0_i32, %arg1 : i32, i32
  }
  func.func @transform_3(%arg0: i32, %arg1: i32, %arg2: i32) -> (i32, i32) {
    %c0_i32 = arith.constant 0 : i32
    return %arg0, %arg1 : i32, i32
  }
}

module attributes {stable_mosaic.version = 11 : i64} {
  func.func @_moe_kernel(%arg0: i32, %arg1: i32, %arg2: i32, %arg3: memref<16x32xf32, #tpu.memory_space<vmem>>, %arg4: memref<16x32xf32, #tpu.memory_space<vmem>>, %arg5: memref<1x32x128xbf16, #tpu.memory_space<vmem>>, %arg6: memref<1x1x128xf32, #tpu.memory_space<vmem>>, %arg7: memref<1x128x32xbf16, #tpu.memory_space<vmem>>, %arg8: memref<1x1x32xf32, #tpu.memory_space<vmem>>, %arg9: memref<1x16x1xf32, #tpu.memory_space<vmem>>, %arg10: memref<16x32xf32, #tpu.memory_space<vmem>>) attributes {dimension_semantics = [#tpu.dimension_semantics<parallel>, #tpu.dimension_semantics<arbitrary>, #tpu.dimension_semantics<arbitrary>], iteration_bounds = array<i64: 1, 5, 1>, scalar_prefetch = 0 : i64, scratch_operands = 0 : i64, tpu.core_type = #tpu.core_type<tc>, window_params = [{transform_indices = @transform_0, window_bounds = array<i64: 16, 32>}, {transform_indices = @transform_1, window_bounds = array<i64: 16, 32>}, {transform_indices = @transform_2, window_bounds = array<i64: 1, 32, 128>}, {transform_indices = @transform_3, window_bounds = array<i64: 1, 1, 128>}, {transform_indices = @transform_4, window_bounds = array<i64: 1, 128, 32>}, {transform_indices = @transform_5, window_bounds = array<i64: 1, 1, 32>}, {transform_indices = @transform_6, window_bounds = array<i64: 1, 16, 1>}, {transform_indices = @transform_7, window_bounds = array<i64: 16, 32>}]} {
    %c0_i32 = arith.constant 0 : i32
    %0 = arith.cmpi eq, %arg1, %c0_i32 : i32
    %c0_i32_0 = arith.constant 0 : i32
    %1 = arith.cmpi eq, %arg2, %c0_i32_0 : i32
    %2 = arith.andi %0, %1 : i1
    %3 = arith.extui %2 : i1 to i32
    %c0_i32_1 = arith.constant 0 : i32
    %4 = arith.cmpi ne, %3, %c0_i32_1 : i32
    scf.if %4 {
      %c0_23 = arith.constant 0 : index
      %c0_24 = arith.constant 0 : index
      %30 = vector.load %arg4[%c0_23, %c0_24] : memref<16x32xf32, #tpu.memory_space<vmem>>, vector<16x32xf32>
      %c0_25 = arith.constant 0 : index
      %c0_26 = arith.constant 0 : index
      %31 = vector.load %arg3[%c0_25, %c0_26] : memref<16x32xf32, #tpu.memory_space<vmem>>, vector<16x32xf32>
      %32 = arith.addf %30, %31 : vector<16x32xf32>
      %c0_27 = arith.constant 0 : index
      %c0_28 = arith.constant 0 : index
      %33 = vector.load %arg10[%c0_27, %c0_28] : memref<16x32xf32, #tpu.memory_space<vmem>>, vector<16x32xf32>
      tpu.vector_store %arg10[%c0_27, %c0_28], %32 {strides = array<i32>} : memref<16x32xf32, #tpu.memory_space<vmem>>, vector<16x32xf32>,
    } else {
    }
    %c0 = arith.constant 0 : index
    %c0_2 = arith.constant 0 : index
    %5 = vector.load %arg3[%c0, %c0_2] : memref<16x32xf32, #tpu.memory_space<vmem>>, vector<16x32xf32>
    %6 = arith.truncf %5 : vector<16x32xf32> to vector<16x32xbf16>
    %c0_3 = arith.constant 0 : index
    %c0_4 = arith.constant 0 : index
    %c0_5 = arith.constant 0 : index
    %7 = vector.load %arg5[%c0_3, %c0_4, %c0_5] : memref<1x32x128xbf16, #tpu.memory_space<vmem>>, vector<1x32x128xbf16>
    %8 = vector.shape_cast %7 : vector<1x32x128xbf16> to vector<32x128xbf16>
    %cst = arith.constant dense<0.000000e+00> : vector<16x128xf32>
    %9 = tpu.matmul %6, %8, %cst {dimension_numbers = #tpu.dot_dimension_numbers<[1], [0], [0], [1], [0, 0, 1, 1], [], []>} : vector<16x32xbf16>, vector<32x128xbf16>, vector<16x128xf32> -> vector<16x128xf32>
    %c0_6 = arith.constant 0 : index
    %c0_7 = arith.constant 0 : index
    %c0_8 = arith.constant 0 : index
    %10 = vector.load %arg6[%c0_6, %c0_7, %c0_8] : memref<1x1x128xf32, #tpu.memory_space<vmem>>, vector<1x1x128xf32>
    %11 = vector.shape_cast %10 : vector<1x1x128xf32> to vector<1x128xf32>
    %12 = vector.broadcast %11 : vector<1x128xf32> to vector<16x128xf32>
    %13 = arith.addf %9, %12 : vector<16x128xf32>
    %cst_9 = arith.constant 0.000000e+00 : f32
    %14 = vector.broadcast %cst_9 : f32 to vector<16x128xf32>
    %15 = arith.maximumf %13, %14 : vector<16x128xf32>
    %16 = arith.truncf %15 : vector<16x128xf32> to vector<16x128xbf16>
    %c0_10 = arith.constant 0 : index
    %c0_11 = arith.constant 0 : index
    %c0_12 = arith.constant 0 : index
    %17 = vector.load %arg7[%c0_10, %c0_11, %c0_12] : memref<1x128x32xbf16, #tpu.memory_space<vmem>>, vector<1x128x32xbf16>
    %18 = vector.shape_cast %17 : vector<1x128x32xbf16> to vector<128x32xbf16>
    %cst_13 = arith.constant dense<0.000000e+00> : vector<16x32xf32>
    %19 = tpu.matmul %16, %18, %cst_13 {dimension_numbers = #tpu.dot_dimension_numbers<[1], [0], [0], [1], [0, 0, 1, 1], [], []>} : vector<16x128xbf16>, vector<128x32xbf16>, vector<16x32xf32> -> vector<16x32xf32>
    %c0_i32_14 = arith.constant 0 : i32
    %20 = arith.cmpi eq, %arg2, %c0_i32_14 : i32
    %21 = arith.extui %20 : i1 to i32
    %c0_i32_15 = arith.constant 0 : i32
    %22 = arith.cmpi ne, %21, %c0_i32_15 : i32
    scf.if %22 {
      %c0_23 = arith.constant 0 : index
      %c0_24 = arith.constant 0 : index
      %30 = vector.load %arg10[%c0_23, %c0_24] : memref<16x32xf32, #tpu.memory_space<vmem>>, vector<16x32xf32>
      %c0_25 = arith.constant 0 : index
      %c0_26 = arith.constant 0 : index
      %c0_27 = arith.constant 0 : index
      %31 = vector.load %arg9[%c0_25, %c0_26, %c0_27] : memref<1x16x1xf32, #tpu.memory_space<vmem>>, vector<1x16x1xf32>
      %32 = vector.shape_cast %31 : vector<1x16x1xf32> to vector<16x1xf32>
      %c0_28 = arith.constant 0 : index
      %c0_29 = arith.constant 0 : index
      %c0_30 = arith.constant 0 : index
      %33 = vector.load %arg8[%c0_28, %c0_29, %c0_30] : memref<1x1x32xf32, #tpu.memory_space<vmem>>, vector<1x1x32xf32>
      %34 = vector.shape_cast %33 : vector<1x1x32xf32> to vector<1x32xf32>
      %35 = vector.broadcast %32 : vector<16x1xf32> to vector<16x32xf32>
      %36 = vector.broadcast %34 : vector<1x32xf32> to vector<16x32xf32>
      %37 = arith.mulf %35, %36 : vector<16x32xf32>
      %38 = arith.addf %30, %37 : vector<16x32xf32>
      %c0_31 = arith.constant 0 : index
      %c0_32 = arith.constant 0 : index
      %39 = vector.load %arg10[%c0_31, %c0_32] : memref<16x32xf32, #tpu.memory_space<vmem>>, vector<16x32xf32>
      tpu.vector_store %arg10[%c0_31, %c0_32], %38 {strides = array<i32>} : memref<16x32xf32, #tpu.memory_space<vmem>>, vector<16x32xf32>,
    } else {
    }
    %c0_16 = arith.constant 0 : index
    %c0_17 = arith.constant 0 : index
    %23 = vector.load %arg10[%c0_16, %c0_17] : memref<16x32xf32, #tpu.memory_space<vmem>>, vector<16x32xf32>
    %c0_18 = arith.constant 0 : index
    %c0_19 = arith.constant 0 : index
    %c0_20 = arith.constant 0 : index
    %24 = vector.load %arg9[%c0_18, %c0_19, %c0_20] : memref<1x16x1xf32, #tpu.memory_space<vmem>>, vector<1x16x1xf32>
    %25 = vector.shape_cast %24 : vector<1x16x1xf32> to vector<16x1xf32>
    %26 = vector.broadcast %25 : vector<16x1xf32> to vector<16x32xf32>
    %27 = arith.mulf %26, %19 : vector<16x32xf32>
    %28 = arith.addf %23, %27 : vector<16x32xf32>
    %c0_21 = arith.constant 0 : index
    %c0_22 = arith.constant 0 : index
    %29 = vector.load %arg10[%c0_21, %c0_22] : memref<16x32xf32, #tpu.memory_space<vmem>>, vector<16x32xf32>
    tpu.vector_store %arg10[%c0_21, %c0_22], %28 {strides = array<i32>} : memref<16x32xf32, #tpu.memory_space<vmem>>, vector<16x32xf32>,
    return
  }
  func.func @transform_0(%arg0: i32, %arg1: i32, %arg2: i32) -> (i32, i32) {
    %c0_i32 = arith.constant 0 : i32
    %c0_i32_0 = arith.constant 0 : i32
    return %arg0, %c0_i32 : i32, i32
  }
  func.func @transform_1(%arg0: i32, %arg1: i32, %arg2: i32) -> (i32, i32) {
    %c0_i32 = arith.constant 0 : i32
    %c0_i32_0 = arith.constant 0 : i32
    return %arg0, %c0_i32 : i32, i32
  }
  func.func @transform_2(%arg0: i32, %arg1: i32, %arg2: i32) -> (i32, i32, i32) {
    %c0_i32 = arith.constant 0 : i32
    %c0_i32_0 = arith.constant 0 : i32
    return %arg1, %c0_i32, %arg2 : i32, i32, i32
  }
  func.func @transform_3(%arg0: i32, %arg1: i32, %arg2: i32) -> (i32, i32, i32) {
    %c0_i32 = arith.constant 0 : i32
    %c0_i32_0 = arith.constant 0 : i32
    return %arg1, %c0_i32, %arg2 : i32, i32, i32
  }
  func.func @transform_4(%arg0: i32, %arg1: i32, %arg2: i32) -> (i32, i32, i32) {
    %c0_i32 = arith.constant 0 : i32
    %c0_i32_0 = arith.constant 0 : i32
    return %arg1, %arg2, %c0_i32 : i32, i32, i32
  }
  func.func @transform_5(%arg0: i32, %arg1: i32, %arg2: i32) -> (i32, i32, i32) {
    %c0_i32 = arith.constant 0 : i32
    %c0_i32_0 = arith.constant 0 : i32
    %c0_i32_1 = arith.constant 0 : i32
    return %arg1, %c0_i32, %c0_i32_0 : i32, i32, i32
  }
  func.func @transform_6(%arg0: i32, %arg1: i32, %arg2: i32) -> (i32, i32, i32) {
    %c0_i32 = arith.constant 0 : i32
    %c0_i32_0 = arith.constant 0 : i32
    return %arg1, %arg0, %c0_i32 : i32, i32, i32
  }
  func.func @transform_7(%arg0: i32, %arg1: i32, %arg2: i32) -> (i32, i32) {
    %c0_i32 = arith.constant 0 : i32
    %c0_i32_0 = arith.constant 0 : i32
    return %arg0, %c0_i32 : i32, i32
  }
}

module attributes {stable_mosaic.version = 11 : i64} {
  func.func @_moe_kernel(%arg0: i32, %arg1: i32, %arg2: i32, %arg3: memref<16x32xf32, #tpu.memory_space<vmem>>, %arg4: memref<16x32xf32, #tpu.memory_space<vmem>>, %arg5: memref<1x32x128xbf16, #tpu.memory_space<vmem>>, %arg6: memref<1x1x128xf32, #tpu.memory_space<vmem>>, %arg7: memref<1x128x32xbf16, #tpu.memory_space<vmem>>, %arg8: memref<1x1x32xf32, #tpu.memory_space<vmem>>, %arg9: memref<1x16x1xf32, #tpu.memory_space<vmem>>, %arg10: memref<16x32xf32, #tpu.memory_space<vmem>>) attributes {dimension_semantics = [#tpu.dimension_semantics<parallel>, #tpu.dimension_semantics<arbitrary>, #tpu.dimension_semantics<arbitrary>], iteration_bounds = array<i64: 1, 5, 1>, scalar_prefetch = 0 : i64, scratch_operands = 0 : i64, tpu.core_type = #tpu.core_type<tc>, window_params = [{transform_indices = @transform_0, window_bounds = array<i64: 16, 32>}, {transform_indices = @transform_1, window_bounds = array<i64: 16, 32>}, {transform_indices = @transform_2, window_bounds = array<i64: 1, 32, 128>}, {transform_indices = @transform_3, window_bounds = array<i64: 1, 1, 128>}, {transform_indices = @transform_4, window_bounds = array<i64: 1, 128, 32>}, {transform_indices = @transform_5, window_bounds = array<i64: 1, 1, 32>}, {transform_indices = @transform_6, window_bounds = array<i64: 1, 16, 1>}, {transform_indices = @transform_7, window_bounds = array<i64: 16, 32>}]} {
    %c0_i32 = arith.constant 0 : i32
    %0 = arith.cmpi eq, %arg1, %c0_i32 : i32
    %c0_i32_0 = arith.constant 0 : i32
    %1 = arith.cmpi eq, %arg2, %c0_i32_0 : i32
    %2 = arith.andi %0, %1 : i1
    %3 = arith.extui %2 : i1 to i32
    %c0_i32_1 = arith.constant 0 : i32
    %4 = arith.cmpi ne, %3, %c0_i32_1 : i32
    scf.if %4 {
      %c0_23 = arith.constant 0 : index
      %c0_24 = arith.constant 0 : index
      %30 = vector.load %arg4[%c0_23, %c0_24] : memref<16x32xf32, #tpu.memory_space<vmem>>, vector<16x32xf32>
      %c0_25 = arith.constant 0 : index
      %c0_26 = arith.constant 0 : index
      %31 = vector.load %arg3[%c0_25, %c0_26] : memref<16x32xf32, #tpu.memory_space<vmem>>, vector<16x32xf32>
      %32 = arith.addf %30, %31 : vector<16x32xf32>
      %c0_27 = arith.constant 0 : index
      %c0_28 = arith.constant 0 : index
      %33 = vector.load %arg10[%c0_27, %c0_28] : memref<16x32xf32, #tpu.memory_space<vmem>>, vector<16x32xf32>
      tpu.vector_store %arg10[%c0_27, %c0_28], %32 {strides = array<i32>} : memref<16x32xf32, #tpu.memory_space<vmem>>, vector<16x32xf32>,
    } else {
    }
    %c0 = arith.constant 0 : index
    %c0_2 = arith.constant 0 : index
    %5 = vector.load %arg3[%c0, %c0_2] : memref<16x32xf32, #tpu.memory_space<vmem>>, vector<16x32xf32>
    %6 = arith.truncf %5 : vector<16x32xf32> to vector<16x32xbf16>
    %c0_3 = arith.constant 0 : index
    %c0_4 = arith.constant 0 : index
    %c0_5 = arith.constant 0 : index
    %7 = vector.load %arg5[%c0_3, %c0_4, %c0_5] : memref<1x32x128xbf16, #tpu.memory_space<vmem>>, vector<1x32x128xbf16>
    %8 = vector.shape_cast %7 : vector<1x32x128xbf16> to vector<32x128xbf16>
    %cst = arith.constant dense<0.000000e+00> : vector<16x128xf32>
    %9 = tpu.matmul %6, %8, %cst {dimension_numbers = #tpu.dot_dimension_numbers<[1], [0], [0], [1], [0, 0, 1, 1], [], []>} : vector<16x32xbf16>, vector<32x128xbf16>, vector<16x128xf32> -> vector<16x128xf32>
    %c0_6 = arith.constant 0 : index
    %c0_7 = arith.constant 0 : index
    %c0_8 = arith.constant 0 : index
    %10 = vector.load %arg6[%c0_6, %c0_7, %c0_8] : memref<1x1x128xf32, #tpu.memory_space<vmem>>, vector<1x1x128xf32>
    %11 = vector.shape_cast %10 : vector<1x1x128xf32> to vector<1x128xf32>
    %12 = vector.broadcast %11 : vector<1x128xf32> to vector<16x128xf32>
    %13 = arith.addf %9, %12 : vector<16x128xf32>
    %cst_9 = arith.constant 0.000000e+00 : f32
    %14 = vector.broadcast %cst_9 : f32 to vector<16x128xf32>
    %15 = arith.maximumf %13, %14 : vector<16x128xf32>
    %16 = arith.truncf %15 : vector<16x128xf32> to vector<16x128xbf16>
    %c0_10 = arith.constant 0 : index
    %c0_11 = arith.constant 0 : index
    %c0_12 = arith.constant 0 : index
    %17 = vector.load %arg7[%c0_10, %c0_11, %c0_12] : memref<1x128x32xbf16, #tpu.memory_space<vmem>>, vector<1x128x32xbf16>
    %18 = vector.shape_cast %17 : vector<1x128x32xbf16> to vector<128x32xbf16>
    %cst_13 = arith.constant dense<0.000000e+00> : vector<16x32xf32>
    %19 = tpu.matmul %16, %18, %cst_13 {dimension_numbers = #tpu.dot_dimension_numbers<[1], [0], [0], [1], [0, 0, 1, 1], [], []>} : vector<16x128xbf16>, vector<128x32xbf16>, vector<16x32xf32> -> vector<16x32xf32>
    %c0_i32_14 = arith.constant 0 : i32
    %20 = arith.cmpi eq, %arg2, %c0_i32_14 : i32
    %21 = arith.extui %20 : i1 to i32
    %c0_i32_15 = arith.constant 0 : i32
    %22 = arith.cmpi ne, %21, %c0_i32_15 : i32
    scf.if %22 {
      %c0_23 = arith.constant 0 : index
      %c0_24 = arith.constant 0 : index
      %30 = vector.load %arg10[%c0_23, %c0_24] : memref<16x32xf32, #tpu.memory_space<vmem>>, vector<16x32xf32>
      %c0_25 = arith.constant 0 : index
      %c0_26 = arith.constant 0 : index
      %c0_27 = arith.constant 0 : index
      %31 = vector.load %arg9[%c0_25, %c0_26, %c0_27] : memref<1x16x1xf32, #tpu.memory_space<vmem>>, vector<1x16x1xf32>
      %32 = vector.shape_cast %31 : vector<1x16x1xf32> to vector<16x1xf32>
      %c0_28 = arith.constant 0 : index
      %c0_29 = arith.constant 0 : index
      %c0_30 = arith.constant 0 : index
      %33 = vector.load %arg8[%c0_28, %c0_29, %c0_30] : memref<1x1x32xf32, #tpu.memory_space<vmem>>, vector<1x1x32xf32>
      %34 = vector.shape_cast %33 : vector<1x1x32xf32> to vector<1x32xf32>
      %35 = vector.broadcast %32 : vector<16x1xf32> to vector<16x32xf32>
      %36 = vector.broadcast %34 : vector<1x32xf32> to vector<16x32xf32>
      %37 = arith.mulf %35, %36 : vector<16x32xf32>
      %38 = arith.addf %30, %37 : vector<16x32xf32>
      %c0_31 = arith.constant 0 : index
      %c0_32 = arith.constant 0 : index
      %39 = vector.load %arg10[%c0_31, %c0_32] : memref<16x32xf32, #tpu.memory_space<vmem>>, vector<16x32xf32>
      tpu.vector_store %arg10[%c0_31, %c0_32], %38 {strides = array<i32>} : memref<16x32xf32, #tpu.memory_space<vmem>>, vector<16x32xf32>,
    } else {
    }
    %c0_16 = arith.constant 0 : index
    %c0_17 = arith.constant 0 : index
    %23 = vector.load %arg10[%c0_16, %c0_17] : memref<16x32xf32, #tpu.memory_space<vmem>>, vector<16x32xf32>
    %c0_18 = arith.constant 0 : index
    %c0_19 = arith.constant 0 : index
    %c0_20 = arith.constant 0 : index
    %24 = vector.load %arg9[%c0_18, %c0_19, %c0_20] : memref<1x16x1xf32, #tpu.memory_space<vmem>>, vector<1x16x1xf32>
    %25 = vector.shape_cast %24 : vector<1x16x1xf32> to vector<16x1xf32>
    %26 = vector.broadcast %25 : vector<16x1xf32> to vector<16x32xf32>
    %27 = arith.mulf %26, %19 : vector<16x32xf32>
    %28 = arith.addf %23, %27 : vector<16x32xf32>
    %c0_21 = arith.constant 0 : index
    %c0_22 = arith.constant 0 : index
    %29 = vector.load %arg10[%c0_21, %c0_22] : memref<16x32xf32, #tpu.memory_space<vmem>>, vector<16x32xf32>
    tpu.vector_store %arg10[%c0_21, %c0_22], %28 {strides = array<i32>} : memref<16x32xf32, #tpu.memory_space<vmem>>, vector<16x32xf32>,
    return
  }
  func.func @transform_0(%arg0: i32, %arg1: i32, %arg2: i32) -> (i32, i32) {
    %c0_i32 = arith.constant 0 : i32
    %c0_i32_0 = arith.constant 0 : i32
    return %arg0, %c0_i32 : i32, i32
  }
  func.func @transform_1(%arg0: i32, %arg1: i32, %arg2: i32) -> (i32, i32) {
    %c0_i32 = arith.constant 0 : i32
    %c0_i32_0 = arith.constant 0 : i32
    return %arg0, %c0_i32 : i32, i32
  }
  func.func @transform_2(%arg0: i32, %arg1: i32, %arg2: i32) -> (i32, i32, i32) {
    %c0_i32 = arith.constant 0 : i32
    %c0_i32_0 = arith.constant 0 : i32
    return %arg1, %c0_i32, %arg2 : i32, i32, i32
  }
  func.func @transform_3(%arg0: i32, %arg1: i32, %arg2: i32) -> (i32, i32, i32) {
    %c0_i32 = arith.constant 0 : i32
    %c0_i32_0 = arith.constant 0 : i32
    return %arg1, %c0_i32, %arg2 : i32, i32, i32
  }
  func.func @transform_4(%arg0: i32, %arg1: i32, %arg2: i32) -> (i32, i32, i32) {
    %c0_i32 = arith.constant 0 : i32
    %c0_i32_0 = arith.constant 0 : i32
    return %arg1, %arg2, %c0_i32 : i32, i32, i32
  }
  func.func @transform_5(%arg0: i32, %arg1: i32, %arg2: i32) -> (i32, i32, i32) {
    %c0_i32 = arith.constant 0 : i32
    %c0_i32_0 = arith.constant 0 : i32
    %c0_i32_1 = arith.constant 0 : i32
    return %arg1, %c0_i32, %c0_i32_0 : i32, i32, i32
  }
  func.func @transform_6(%arg0: i32, %arg1: i32, %arg2: i32) -> (i32, i32, i32) {
    %c0_i32 = arith.constant 0 : i32
    %c0_i32_0 = arith.constant 0 : i32
    return %arg1, %arg0, %c0_i32 : i32, i32, i32
  }
  func.func @transform_7(%arg0: i32, %arg1: i32, %arg2: i32) -> (i32, i32) {
    %c0_i32 = arith.constant 0 : i32
    %c0_i32_0 = arith.constant 0 : i32
    return %arg0, %c0_i32 : i32, i32
  }
}

</mosaic_0001>

<bundles_post_ra>
// kernel: fwd.16
= control target key start
LH: loop header
LB: loop body
LE: loop exit
PB: predicated region body
PF: predicated region fallthrough
CT: control target
= control target key end

     0   :  { %vm22_vm0 = vcmask 261120   ;;  %v146_v6 = vmov 0.0   ;;  %vm147_vm1 = vmmov 0   ;;  %vm115_vm2 = vcmask 523264   ;;  %s200_s0 = inlined_call_operand.vmem [shape: f32[16,32], index: 0, kind: input, shape index: {}]   ;;  %s201_s2 = inlined_call_operand.vmem [shape: bf16[32,64], index: 2, kind: input, shape index: {}]   ;;  %s202_s1 = inlined_call_operand.vmem [shape: f32[1,32], index: 1, kind: input, shape index: {}]   ;;  %s203_s3 = inlined_call_operand.vmem [shape: f32[1,64], index: 3, kind: input, shape index: {}]   ;;  %s204_s4 = inlined_call_operand.vmem [shape: f32[16,64], index: 4, kind: output, shape index: {}]  }
   0x1   :  { %v18_v0 = vld [vmem:[%s200_s0] sm:$0xff]  ;;  %v19_v1 = vld [vmem:[%s200_s0 + $0x8] sm:$0xff]  ;;  %130 = vmatprep.subr.bf16.mxu0 %v146_v6  ;;  %134 = vmatprep.mubr.msk.bf16.mxu0 %vm147_vm1, %v146_v6 }
   0x2   :  { %v20_v2 = vmul.f32 %v18_v0, %v18_v0  ;;  %v21_v3 = vmul.f32 %v19_v1, %v19_v1  ;;  %v140_v7 = vld [vmem:[%s201_s2] sm:$0xff]   ;;  %v141_v8 = vld [vmem:[%s201_s2 + $0x8] sm:$0xff]  }
   0x3   :  { %131 = vmatpush3.bf16.msra.mxu0 %v140_v7  ;;  %v122_v18 = vld [vmem:[%s202_s1] ss:$0 sm:$0xff] }
   0x4   :  { %v23_v4 = vsel %vm22_vm0, %v20_v2, 0.0  ;;  %v26_v5 = vsel %vm22_vm0, %v21_v3, 0.0  ;;  %132 = vmatprep.subr.bf16.mxu0 %v146_v6  ;;  %v123_v23 = vld [vmem:[%s203_s3] ss:$0 sm:$0xff] }
   0x5   :  { %24 = vadd.xlane.f32.xlu0 %v23_v4 }
   0x7   :  { %133 = vmatpush3.bf16.msra.mxu0 %v141_v8 }
   0x9   :  { %27 = vadd.xlane.f32.xlu0 %v26_v5 }
  0x92   :  { %v25_v9 = vpop.xlane.xlu0 %24 }
  0x93   :  { %v30_v10 = vmul.f32 0.03125, %v25_v9 }
  0x95   :  { %v33_v11 = vadd.f32 1e-06, %v30_v10 }
  0x96   :  { %v28_v12 = vpop.xlane.xlu0 %27 }
  0x97   :  { %142 = vrsqrt.f32 %v33_v11  ;;  %v31_v13 = vmul.f32 0.03125, %v28_v12 }
  0x99   :  { %v34_v14 = vadd.f32 1e-06, %v31_v13 }
  0x9b   :  { %144 = vrsqrt.f32 %v34_v14 }
  0xa1   :  { %v143_v15 = vpop.eup %142 }
  0xa2   :  { %v37_v16 = vmul.f32 %v143_v15, %v18_v0 }
  0xa4   :  { %v45_v20 = vmul.f32 %v122_v18, %v37_v16 }
  0xa5   :  { %v145_v17 = vpop.eup %144 }
  0xa6   :  { %v38_v19 = vmul.f32 %v145_v17, %v19_v1 }
  0xa8   :  { %v46_v21 = vmul.f32 %v122_v18, %v38_v19 }
  0xaa   :  { %v47_v22 = vpack.c.bf16 %v46_v21, %v45_v20 }
  0xac   :  { %135 = vmatmul.mubr.msk.bf16.vlgmr.msra.gmra.mrb[0].mxu0 %vm22_vm0, %v47_v22 }
 0x17f   :  { %v108_v24 = vpop.f32.mrb[0].mxu0 }
 0x180   :  { %v109_v25 = vadd.f32 %v123_v23, %v108_v24  ;;  %v136_v26 = vpop.f32.mrb[1].mxu0 }
 0x181   :  { %v111_v27 = vpop.f32.mrb[2].mxu0 }
 0x182   :  { %116 = vst.msk [vmem:[%s204_s4] sm:$0xff] %vm115_vm2, %v109_v25  ;;  %v112_v28 = vadd.f32 %v123_v23, %v111_v27  ;;  %v137_v29 = vpop.f32.mrb[3].mxu0 }
 0x184   :  { %117 = vst.msk [vmem:[%s204_s4 + $0x8] sm:$0xff] %vm115_vm2, %v112_v28 }

// kernel: fwd.17
= control target key start
LH: loop header
LB: loop body
LE: loop exit
PB: predicated region body
PF: predicated region fallthrough
CT: control target
= control target key end

     0   :  { %vm19_vm0 = vcmask 523264   ;;  %v119_v0 = vmov 0.0   ;;  %vm120_vm1 = vmmov 0   ;;  %vm35_vm2 = vcmask 130048   ;;  %s165_s1 = inlined_call_operand.vmem [shape: bf16[16,64], index: 1, kind: input, shape index: {}]   ;;  %s166_s0 = inlined_call_operand.vmem [shape: f32[16,16], index: 0, kind: input, shape index: {}]   ;;  %s167_s2 = inlined_call_operand.vmem [shape: f32[1,64], index: 2, kind: input, shape index: {}]   ;;  %s168_s3 = inlined_call_operand.vmem [shape: f32[16,64], index: 3, kind: output, shape index: {}]  }
   0x1   :  { %20 = vst.msk [vmem:[#allocation2] sm:$0xff] %vm19_vm0, %v119_v0  ;;  %21 = vst.msk [vmem:[#allocation2 + $0x8] sm:$0xff] %vm19_vm0, %v119_v0  ;;  %110 = vmatprep.subr.bf16.mxu0 %v119_v0  ;;  %v118_v1 = vld [vmem:[%s165_s1] sm:$0xff]   ;;  %112 = vmatprep.mubr.msk.bf16.mxu0 %vm120_vm1, %v119_v0  ;;  %v25_v3 = vld [vmem:[%s166_s0 + $0x8] sm:$0xff] }
   0x2   :  { %v24_v2 = vld [vmem:[%s166_s0] sm:$0xff]  ;;  %111 = vmatpush3.bf16.msra.mxu0 %v118_v1 }
   0x3   :  { %v26_v4 = vpack.c.bf16 %v25_v3, %v24_v2  ;;  %v107_v13 = vld [vmem:[%s167_s2] ss:$0 sm:$0xff] }
   0x5   :  { %113 = vmatmul.mubr.msk.bf16.vlgmr.msra.gmra.mrb[0].mxu0 %vm35_vm2, %v26_v4 }
   0x8   :  { %v22_v5 = vld [vmem:[#allocation2] sm:$0xff]  ;;  %v23_v7 = vld [vmem:[#allocation2 + $0x8] sm:$0xff] }
  0xd8   :  { %v73_v6 = vpop.f32.mrb[0].mxu0 }
  0xd9   :  { %v80_v8 = vadd.f32 %v73_v6, %v22_v5  ;;  %v114_v9 = vpop.f32.mrb[1].mxu0 }
  0xda   :  { %v76_v10 = vpop.f32.mrb[2].mxu0 }
  0xdb   :  { %83 = vst.msk [vmem:[#allocation2] sm:$0xff] %vm19_vm0, %v80_v8  ;;  %v81_v11 = vadd.f32 %v76_v10, %v23_v7  ;;  %v115_v12 = vpop.f32.mrb[3].mxu0 }
  0xdd   :  { %84 = vst.msk [vmem:[#allocation2 + $0x8] sm:$0xff] %vm19_vm0, %v81_v11 }
  0xe2   :  { %v88_v14 = vld [vmem:[#allocation2] sm:$0xff] }
  0xe3   :  { %v97_v15 = vadd.f32 %v107_v13, %v88_v14 }
  0xe4   :  { %v89_v16 = vld [vmem:[#allocation2 + $0x8] sm:$0xff] }
  0xe5   :  { %99 = vst.msk [vmem:[%s168_s3] sm:$0xff] %vm19_vm0, %v97_v15  ;;  %v98_v17 = vadd.f32 %v107_v13, %v89_v16 }
  0xe7   :  { %100 = vst.msk [vmem:[%s168_s3 + $0x8] sm:$0xff] %vm19_vm0, %v98_v17 }

// kernel: fwd.21
= control target key start
LH: loop header
LB: loop body
LE: loop exit
PB: predicated region body
PF: predicated region fallthrough
CT: control target
= control target key end

     0   :  { %vm15_vm0 = vcmask 261120   ;;  %s85_s0 = inlined_call_operand.vmem [shape: f32[16,32], index: 0, kind: input, shape index: {}]   ;;  %s86_s1 = inlined_call_operand.vmem [shape: f32[1,32], index: 1, kind: input, shape index: {}]   ;;  %s87_s2 = inlined_call_operand.vmem [shape: f32[16,32], index: 2, kind: output, shape index: {}]  }
   0x1   :  { %v11_v0 = vld [vmem:[%s85_s0] sm:$0xff]  ;;  %v12_v1 = vld [vmem:[%s85_s0 + $0x8] sm:$0xff] }
   0x2   :  { %v13_v2 = vmul.f32 %v11_v0, %v11_v0  ;;  %v14_v3 = vmul.f32 %v12_v1, %v12_v1  ;;  %v46_v13 = vld [vmem:[%s86_s1] ss:$0 sm:$0xff] }
   0x4   :  { %v16_v4 = vsel %vm15_vm0, %v13_v2, 0.0  ;;  %v19_v5 = vsel %vm15_vm0, %v14_v3, 0.0 }
   0x5   :  { %17 = vadd.xlane.f32.xlu0 %v16_v4 }
   0x9   :  { %20 = vadd.xlane.f32.xlu0 %v19_v5 }
  0x92   :  { %v18_v6 = vpop.xlane.xlu0 %17 }
  0x93   :  { %v23_v7 = vmul.f32 0.03125, %v18_v6 }
  0x95   :  { %v26_v8 = vadd.f32 1e-06, %v23_v7 }
  0x96   :  { %v21_v9 = vpop.xlane.xlu0 %20 }
  0x97   :  { %47 = vrsqrt.f32 %v26_v8  ;;  %v24_v10 = vmul.f32 0.03125, %v21_v9 }
  0x99   :  { %v27_v11 = vadd.f32 1e-06, %v24_v10 }
  0x9b   :  { %49 = vrsqrt.f32 %v27_v11 }
  0xa1   :  { %v48_v12 = vpop.eup %47 }
  0xa2   :  { %v30_v14 = vmul.f32 %v48_v12, %v11_v0 }
  0xa4   :  { %v38_v15 = vmul.f32 %v46_v13, %v30_v14 }
  0xa5   :  { %v50_v16 = vpop.eup %49 }
  0xa6   :  { %40 = vst.msk [vmem:[%s87_s2] sm:$0xff] %vm15_vm0, %v38_v15  ;;  %v31_v17 = vmul.f32 %v50_v16, %v12_v1 }
  0xa8   :  { %v39_v18 = vmul.f32 %v46_v13, %v31_v17 }
  0xaa   :  { %41 = vst.msk [vmem:[%s87_s2 + $0x8] sm:$0xff] %vm15_vm0, %v39_v18 }

// kernel: fwd.20
= control target key start
LH: loop header
LB: loop body
LE: loop exit
PB: predicated region body
PF: predicated region fallthrough
CT: control target
= control target key end

     0   :  { %vm22_vm0 = vcmask 261120   ;;  %v138_v0 = vmov 0.0   ;;  %vm139_vm1 = vmmov 0   ;;  %s199_s1 = inlined_call_operand.vmem [shape: bf16[32,32], index: 1, kind: input, shape index: {}]   ;;  %s200_s0 = inlined_call_operand.vmem [shape: f32[16,32], index: 0, kind: input, shape index: {}]   ;;  %s201_s2 = inlined_call_operand.vmem [shape: f32[1,32], index: 2, kind: input, shape index: {}]   ;;  %s202_s3 = inlined_call_operand.vmem [shape: f32[16,32], index: 3, kind: input, shape index: {}]   ;;  %s203_s4 = inlined_call_operand.vmem [shape: f32[16,32], index: 4, kind: output, shape index: {}]  }
   0x1   :  { %126 = vmatprep.subr.bf16.mxu0 %v138_v0  ;;  %v136_v1 = vld [vmem:[%s199_s1] sm:$0xff]   ;;  %130 = vmatprep.mubr.msk.bf16.mxu0 %vm139_vm1, %v138_v0  ;;  %23 = vst.msk [vmem:[#allocation2] sm:$0xff] %vm22_vm0, %v138_v0  ;;  %24 = vst.msk [vmem:[#allocation2 + $0x8] sm:$0xff] %vm22_vm0, %v138_v0  ;;  %v137_v2 = vld [vmem:[%s199_s1 + $0x8] sm:$0xff]  }
   0x2   :  { %127 = vmatpush3.bf16.msra.mxu0 %v136_v1  ;;  %v27_v3 = vld [vmem:[%s200_s0] sm:$0xff]  ;;  %v28_v4 = vld [vmem:[%s200_s0 + $0x8] sm:$0xff] }
   0x3   :  { %128 = vmatprep.subr.bf16.mxu0 %v138_v0  ;;  %v29_v5 = vpack.c.bf16 %v28_v4, %v27_v3  ;;  %v122_v14 = vld [vmem:[%s201_s2] ss:$0 sm:$0xff]  ;;  %v110_v19 = vld [vmem:[%s202_s3 + $0x8] sm:$0xff] }
   0x4   :  { %v109_v16 = vld [vmem:[%s202_s3] sm:$0xff] }
   0x6   :  { %129 = vmatpush3.bf16.msra.mxu0 %v137_v2 }
   0x8   :  { %v25_v6 = vld [vmem:[#allocation2] sm:$0xff]  ;;  %v26_v8 = vld [vmem:[#allocation2 + $0x8] sm:$0xff] }
   0x9   :  { %131 = vmatmul.mubr.msk.bf16.vlgmr.msra.gmra.mrb[0].mxu0 %vm22_vm0, %v29_v5 }
  0xdc   :  { %v84_v7 = vpop.f32.mrb[0].mxu0 }
  0xdd   :  { %v91_v9 = vadd.f32 %v84_v7, %v25_v6  ;;  %v132_v10 = vpop.f32.mrb[1].mxu0 }
  0xde   :  { %v87_v11 = vpop.f32.mrb[2].mxu0 }
  0xdf   :  { %93 = vst.msk [vmem:[#allocation2] sm:$0xff] %vm22_vm0, %v91_v9  ;;  %v92_v12 = vadd.f32 %v87_v11, %v26_v8  ;;  %v133_v13 = vpop.f32.mrb[3].mxu0 }
  0xe1   :  { %94 = vst.msk [vmem:[#allocation2 + $0x8] sm:$0xff] %vm22_vm0, %v92_v12 }
  0xe6   :  { %v98_v15 = vld [vmem:[#allocation2] sm:$0xff] }
  0xe7   :  { %v107_v17 = vadd.f32 %v122_v14, %v98_v15 }
  0xe8   :  { %v99_v18 = vld [vmem:[#allocation2 + $0x8] sm:$0xff] }
  0xe9   :  { %v111_v20 = vadd.f32 %v109_v16, %v107_v17  ;;  %v108_v21 = vadd.f32 %v122_v14, %v99_v18 }
  0xeb   :  { %113 = vst.msk [vmem:[%s203_s4] sm:$0xff] %vm22_vm0, %v111_v20  ;;  %v112_v22 = vadd.f32 %v110_v19, %v108_v21 }
  0xed   :  { %114 = vst.msk [vmem:[%s203_s4 + $0x8] sm:$0xff] %vm22_vm0, %v112_v22 }

// kernel: fwd.22
= control target key start
LH: loop header
LB: loop body
LE: loop exit
PB: predicated region body
PF: predicated region fallthrough
CT: control target
= control target key end

     0   :  { %vm19_vm0 = vcmask 64512   ;;  %v132_v0 = vmov 0.0   ;;  %vm133_vm1 = vmmov 0   ;;  %vm43_vm2 = vcmask 261120   ;;  %s181_s1 = inlined_call_operand.vmem [shape: bf16[32,8], index: 1, kind: input, shape index: {}]   ;;  %s182_s0 = inlined_call_operand.vmem [shape: f32[16,32], index: 0, kind: input, shape index: {}]   ;;  %s183_s2 = inlined_call_operand.vmem [shape: f32[1,8], index: 2, kind: input, shape index: {}]   ;;  %s184_s3 = inlined_call_operand.vmem [shape: f32[16,8], index: 3, kind: output, shape index: {}]  }
   0x1   :  { %120 = vmatprep.subr.bf16.mxu0 %v132_v0  ;;  %v130_v1 = vld [vmem:[%s181_s1] sm:$0xff]   ;;  %124 = vmatprep.mubr.msk.bf16.mxu0 %vm133_vm1, %v132_v0  ;;  %20 = vst.msk [vmem:[#allocation2] sm:$0xff] %vm19_vm0, %v132_v0  ;;  %21 = vst.msk [vmem:[#allocation2 + $0x8] sm:$0xff] %vm19_vm0, %v132_v0  ;;  %v131_v2 = vld [vmem:[%s181_s1 + $0x8] sm:$0xff]  }
   0x2   :  { %121 = vmatpush3.bf16.msra.mxu0 %v130_v1  ;;  %v24_v3 = vld [vmem:[%s182_s0] sm:$0xff]  ;;  %v25_v4 = vld [vmem:[%s182_s0 + $0x8] sm:$0xff] }
   0x3   :  { %122 = vmatprep.subr.bf16.mxu0 %v132_v0  ;;  %v26_v5 = vpack.c.bf16 %v25_v4, %v24_v3  ;;  %v116_v14 = vld [vmem:[%s183_s2] ss:$0 sm:$0xff] }
   0x6   :  { %123 = vmatpush3.bf16.msra.mxu0 %v131_v2 }
   0x8   :  { %v22_v6 = vld [vmem:[#allocation2] sm:$0xff]  ;;  %v23_v8 = vld [vmem:[#allocation2 + $0x8] sm:$0xff] }
   0x9   :  { %125 = vmatmul.mubr.msk.bf16.vlgmr.msra.gmra.mrb[0].mxu0 %vm43_vm2, %v26_v5 }
  0xdc   :  { %v81_v7 = vpop.f32.mrb[0].mxu0 }
  0xdd   :  { %v88_v9 = vadd.f32 %v81_v7, %v22_v6  ;;  %v126_v10 = vpop.f32.mrb[1].mxu0 }
  0xde   :  { %v84_v11 = vpop.f32.mrb[2].mxu0 }
  0xdf   :  { %91 = vst.msk [vmem:[#allocation2] sm:$0xff] %vm19_vm0, %v88_v9  ;;  %v89_v12 = vadd.f32 %v84_v11, %v23_v8  ;;  %v127_v13 = vpop.f32.mrb[3].mxu0 }
  0xe1   :  { %92 = vst.msk [vmem:[#allocation2 + $0x8] sm:$0xff] %vm19_vm0, %v89_v12 }
  0xe6   :  { %v96_v15 = vld [vmem:[#allocation2] sm:$0xff] }
  0xe7   :  { %v105_v16 = vadd.f32 %v116_v14, %v96_v15 }
  0xe8   :  { %v97_v17 = vld [vmem:[#allocation2 + $0x8] sm:$0xff] }
  0xe9   :  { %107 = vst.msk [vmem:[%s184_s3] sm:$0xff] %vm19_vm0, %v105_v16  ;;  %v106_v18 = vadd.f32 %v116_v14, %v97_v17 }
  0xeb   :  { %108 = vst.msk [vmem:[%s184_s3 + $0x8] sm:$0xff] %vm19_vm0, %v106_v18 }

// kernel: fwd.19
= control target key start
LH: loop header
LB: loop body
LE: loop exit
PB: predicated region body
PF: predicated region fallthrough
CT: control target
= control target key end

     0   :  { %s640_s12 = smov 0   ;;  %s642_s13 = smov 0   ;;  %s695_s0 = inlined_call_operand.vmem [shape: f32[8,8,16], index: 0, kind: input, shape index: {}]   ;;  %s696_s1 = inlined_call_operand.vmem [shape: f32[8,8,16], index: 1, kind: input, shape index: {}]   ;;  %s697_s2 = inlined_call_operand.vmem [shape: f32[8,8,8], index: 2, kind: input, shape index: {}]   ;;  %s698_s3 = inlined_call_operand.vmem [shape: f32[8,8,8], index: 3, kind: output, shape index: {}]  }
   0x1   :  { %s644_s14 = smov 0  }
   0x2 LB: > { %s32_s15 = sadd.s32 1, %s610_s13  ;;  %p531_p0 = scmp.ge.s32.totalorder %s614_s14, 1  ;;  %s614_s14 = sphi %s644_s14, %s13_s14   ;;  %s610_s13 = sphi %s642_s13, %s700_s13   ;;  %s606_s12 = sphi %s640_s12, %s699_s12  }
   0x3   : > { %p34_p1 = scmp.ge.s32.totalorder %s32_s15, 8  ;;  %p190_p2 = scmp.lt.s32.totalorder %s614_s14, 9 }
   0x5   : > { %s702_s15 = smov (%p34_p1, %s32_s15), 0  ;;  %p191_p3 = pnand %p531_p0, %p190_p2 }
   0x6   : > { %p232_p4 = scmp.lt.s32.totalorder (!%p191_p3), %s606_s12, 7  ;;  %v616_v0 = vmov (!%p191_p3), 0.0   ;;  %vm617_vm0 = vmmov (!%p191_p3), 0   ;;  %vm275_vm1 = vcmask (!%p191_p3), 130048   ;;  %vm268_vm2 = vcmask (!%p191_p3), 64512  }
   0x7   : > { %194 = sbr.rel (%p191_p3) target bundleno = 823 (0x337), region = 32  ;;  %544 = vmatprep.subr.bf16.mxu0 (!%p191_p3), %v616_v0  ;;  %546 = vmatprep.mubr.msk.bf16.mxu0 (!%p191_p3), %vm617_vm0, %v616_v0  ;;  %269 = vst.msk [vmem:[#allocation4] sm:$0xff] (!%p191_p3), %vm268_vm2, %v616_v0  ;;  %vm265_vm3 = vcmask (!%p191_p3), 7168   ;;  %v618_v7 = vmov (!%p191_p3), -inf   ;;  %v619_v13 = vmov (!%p191_p3), 0   ;;  %vm360_vm4 = vcmask (!%p191_p3), 1043456  }
   0x8   : > { %550 = vmatprep.subr.bf16.mxu1 (!%p191_p3), %v616_v0  ;;  %552 = vmatprep.mubr.msk.bf16.mxu1 (!%p191_p3), %vm617_vm0, %v616_v0  ;;  %266 = vst.msk [vmem:[#allocation2] sm:$0xff] (!%p191_p3), %vm265_vm3, %v618_v7  ;;  %267 = vst.msk [vmem:[#allocation3] sm:$0xff] (!%p191_p3), %vm265_vm3, %v616_v0 }
   0x9   : > { %584 = vset.pattern.permute.xlu0 (!%p191_p3), %v619_v13  ;;  %585 = vset.pattern.permute.xlu1 (!%p191_p3), %v619_v13 }
   0xe   : > { %s704_s12 = smov (!%p232_p4, %s606_s12), 7  ;;  %v347_v35 = vld [vmem:[#allocation4] sm:$0xff] }
   0xf   : > { %s658_s16 = sshll.u32 %s704_s12, 3  ;;  %v322_v14 = vld [vmem:[#allocation2] sm:$0xff]  ;;  %v339_v29 = vld [vmem:[#allocation3] sm:$0xff] }
  0x10   : > { %s245_s19 = scalar_lea.vmem %s696_s1, %s658_s16  ;;  %s238_s22 = scalar_lea.vmem %s695_s0, %s658_s16 }
  0x11   : > { %v273_v1 = vld [vmem:[%s245_s19] sm:$0xff]  ;;  %s252_s25 = scalar_lea.vmem %s697_s2, %s658_s16  ;;  %s259_s28 = scalar_lea.vmem %s698_s3, %s658_s16 }
  0x12   : > { %v270_v2 = vld [vmem:[%s238_s22] sm:$0xff]  ;;  %v274_v3 = vpack.c.bf16 %v273_v1, %v273_v1 }
  0x13   : > { %v271_v5 = vmul.f32 0.35355338, %v270_v2  ;;  %v355_v18 = vld [vmem:[%s252_s25] sm:$0xff] }
  0x14   : > { %v280_v4 = vsel %vm275_vm1, %v274_v3, 0  ;;  %v356_v19 = vpack.c.bf16 %v355_v18, %v355_v18 }
  0x15   : > { %545 = vmatpush3.bf16.xpose.msra.mxu0 %v280_v4  ;;  %v272_v6 = vpack.c.bf16 %v271_v5, %v271_v5 }
  0x16   : > { %v362_v20 = vsel %vm360_vm4, %v356_v19, 0 }
  0x17   : > { %551 = vmatpush3.bf16.msra.mxu1 %v362_v20 }
  0x1c   : > { %547 = vmatmul.mubr.msk.bf16.vlgmr.msra.gmra.mrb[0].mxu0 %vm275_vm1, %v272_v6 }
  0xef   : > { %v316_v8 = vpop.f32.mrb[0].mxu0 }
  0xf0   : > { %v548_v9 = vpop.f32.mrb[1].mxu0  ;;  %v324_v10 = vsel %vm268_vm2, %v316_v8, -inf }
  0xf1   : > { %325 = vmax.xlane.f32.xlu0 %v324_v10  ;;  %v319_v11 = vpop.f32.mrb[2].mxu0 }
  0xf2   : > { %v549_v12 = vpop.f32.mrb[3].mxu0 }
 0x17e   : > { %v326_v15 = vpop.xlane.xlu0 %325 }
 0x17f   : > { %v327_v16 = vmax.f32 %v322_v14, %v326_v15 }
 0x181   : > { %v328_v17 = vsub.f32 %v322_v14, %v327_v16  ;;  %406 = vst.msk [vmem:[#allocation2] sm:$0xff] %vm265_vm3, %v327_v16  ;;  %333 = vperm.xlu0 %584, %v327_v16  }
 0x183   : > { %v329_v27 = vmul.f32 1.442695, %v328_v17 }
 0x200   : > { %v334_v21 = vpop.permute.xlu0 %333 }
 0x201   : > { %v336_v22 = vsub.f32 %v316_v8, %v334_v21 }
 0x203   : > { %v337_v23 = vmul.f32 1.442695, %v336_v22 }
 0x205   : > { %586 = vpow2.f32 %v337_v23 }
 0x206   : > { %588 = vpow2.f32 %v329_v27 }
 0x20f   : > { %v587_v24 = vpop.eup %586 }
 0x210   : > { %v341_v25 = vsel %vm268_vm2, %v587_v24, 0.0  ;;  %v354_v26 = vpack.c.bf16 %v587_v24, %v587_v24  ;;  %v589_v28 = vpop.eup %588 }
 0x211   : > { %342 = vadd.xlane.f32.xlu1 %v341_v25  ;;  %v340_v30 = vmul.f32 %v589_v28, %v339_v29 }
 0x212   : > { %553 = vmatmul.mubr.msk.bf16.vlgmr.msra.gmra.mrb[0].mxu1 %vm268_vm2, %v354_v26 }
 0x222   : > { %350 = vperm.xlu1 %585, %v589_v28  }
 0x29e   : > { %v343_v31 = vpop.xlane.xlu1 %342 }
 0x29f   : > { %v344_v32 = vadd.f32 %v343_v31, %v340_v30 }
 0x2a1   : > { %346 = vst.msk [vmem:[#allocation3] sm:$0xff] %vm265_vm3, %v344_v32 }
 0x2a2   : > { %v351_v36 = vpop.permute.xlu1 %350 }
 0x2a3   : > { %v353_v37 = vmul.f32 %v351_v36, %v347_v35 }
 0x2a8   : > { %v411_v33 = vld [vmem:[#allocation3] sm:$0xff] }
 0x2a9   : > { %590 = vrcp.f32 %v411_v33 }
 0x2b3   : > { %v591_v34 = vpop.eup %590 }
 0x2b4   : > { %415 = vperm.xlu1 %585, %v591_v34  }
 0x2e5   : > { %v398_v38 = vpop.f32.mrb[0].mxu1 }
 0x2e6   : > { %v404_v39 = vadd.f32 %v398_v38, %v353_v37  ;;  %v554_v40 = vpop.f32.mrb[1].mxu1 }
 0x2e7   : > { %v401_v41 = vpop.f32.mrb[2].mxu1 }
 0x2e8   : > { %405 = vst.msk [vmem:[#allocation4] sm:$0xff] %vm268_vm2, %v404_v39  ;;  %v555_v42 = vpop.f32.mrb[3].mxu1 }
 0x2ef   : > { %v410_v43 = vld [vmem:[#allocation4] sm:$0xff] }
 0x333   : > { %v416_v44 = vpop.permute.xlu1 %415 }
 0x334   : > { %v418_v45 = vmul.f32 %v416_v44, %v410_v43 }
 0x336   : > { %419 = vst.msk [vmem:[%s259_s28] sm:$0xff] %vm268_vm2, %v418_v45 }
 0x337 PF: > { %s13_s14 = sadd.s32 1, %s614_s14   ;;  %s699_s12 = smov %s610_s13 }
 0x338   : > { %p10_p5 = scmp.ge.s32.totalorder %s13_s14, 10   ;;  %s700_s13 = smov %s702_s15 }
 0x33a   :  { %12 = sbr.rel (!%p10_p5) target bundleno = 2 (0x2), region = 76 }

// kernel: fwd.23
= control target key start
LH: loop header
LB: loop body
LE: loop exit
PB: predicated region body
PF: predicated region fallthrough
CT: control target
= control target key end

     0   :  { %s1048_s24 = smov 0   ;;  %s1050_s25 = smov 0   ;;  %s1173_s0 = inlined_call_operand.vmem [shape: f32[16,32], index: 0, kind: input, shape index: {}]   ;;  %s1174_s1 = inlined_call_operand.vmem [shape: f32[16,32], index: 1, kind: input, shape index: {}]   ;;  %s1175_s2 = inlined_call_operand.vmem [shape: bf16[5,32,128], index: 2, kind: input, shape index: {}]   ;;  %s1176_s3 = inlined_call_operand.vmem [shape: f32[5,1,128], index: 3, kind: input, shape index: {}]   ;;  %s1177_s4 = inlined_call_operand.vmem [shape: bf16[5,128,32], index: 4, kind: input, shape index: {}]   ;;  %s1178_s5 = inlined_call_operand.vmem [shape: f32[5,1,32], index: 5, kind: input, shape index: {}]   ;;  %s1179_s6 = inlined_call_operand.vmem [shape: f32[5,16,1], index: 6, kind: input, shape index: {}]   ;;  %s1180_s7 = inlined_call_operand.vmem [shape: f32[16,32], index: 7, kind: output, shape index: {}]  }
   0x1   :  { %s1052_s26 = smov 0  }
   0x2 LB: > { %s32_s27 = sadd.s32 1, %s999_s25  ;;  %p873_p0 = scmp.ge.s32.totalorder %s1003_s26, 1  ;;  %s1003_s26 = sphi %s1052_s26, %s17_s26   ;;  %s999_s25 = sphi %s1050_s25, %s1182_s25   ;;  %s995_s24 = sphi %s1048_s24, %s1181_s24  }
   0x3   : > { %p34_p1 = scmp.ge.s32.totalorder %s32_s27, 5  ;;  %p338_p2 = scmp.lt.s32.totalorder %s1003_s26, 6 }
   0x5   : > { %s1184_s27 = smov (%p34_p1, %s32_s27), 0  ;;  %p339_p3 = pnand %p873_p0, %p338_p2 }
   0x6   : > { %p422_p4 = scmp.lt.s32.totalorder (!%p339_p3), %s995_s24, 4  ;;  %p466_p5 = scmp.eq.s32.totalorder (!%p339_p3), %s995_s24, 0 }
   0x7   : > { %342 = sbr.rel (%p339_p3) target bundleno = 469 (0x1d5), region = 48 }
   0xe   : > { %s1186_s24 = smov (!%p422_p4, %s995_s24), 4  ;;  %471 = sbr.rel (!%p466_p5) target bundleno = 21 (0x15), region = 52 }
   0xf   : > { %s898_s28 = sshll.u32 %s1186_s24, 4  ;;  %s435_s8 = scalar_lea.vmem %s1176_s3, %s1186_s24  ;;  %v472_v0 = vld [vmem:[%s1174_s1] sm:$0xff] (%p466_p5)  ;;  %vm478_vm0 = vcmask (%p466_p5), 261120   ;;  %v473_v2 = vld [vmem:[%s1174_s1 + $0x8] sm:$0xff] (%p466_p5) }
  0x10   : > { %s429_s11 = scalar_lea.vmem %s1175_s2, %s898_s28  ;;  %s899_s12 = sshll.u32 %s1186_s24, 6  ;;  %v474_v1 = vld [vmem:[%s1173_s0] sm:$0xff] (%p466_p5)  ;;  %v475_v4 = vld [vmem:[%s1173_s0 + $0x8] sm:$0xff] (%p466_p5) }
  0x11   : > { %s1080_s15 = scalar_lea.vmem %s1177_s4, %s899_s12  ;;  %s448_s18 = scalar_lea.vmem %s1178_s5, %s1186_s24  ;;  %v476_v3 = vadd.f32 (%p466_p5), %v474_v1, %v472_v0  ;;  %v477_v5 = vadd.f32 (%p466_p5), %v475_v4, %v473_v2 }
  0x12   : > { %s1089_s21 = scalar_lea.vmem %s1179_s6, %s898_s28 }
  0x13   : > { %479 = vst.msk [vmem:[%s1180_s7] sm:$0xff] (%p466_p5), %vm478_vm0, %v476_v3  ;;  %480 = vst.msk [vmem:[%s1180_s7 + $0x8] sm:$0xff] (%p466_p5), %vm478_vm0, %v477_v5 }
  0x15 PF: > { %v971_v6 = vld [vmem:[%s429_s11] sm:$0xff]   ;;  %v1005_v7 = vmov 0.0   ;;  %v972_v8 = vld [vmem:[%s429_s11 + $0x8] sm:$0xff]   ;;  %vm1006_vm1 = vmmov 0   ;;  %vm507_vm2 = vcmask 261120   ;;  %v975_v14 = vld [vmem:[%s1080_s15 + $0x10] sm:$0xff]  }
  0x16   : > { %914 = vmatprep.subr.bf16.mxu0 %v1005_v7  ;;  %922 = vmatprep.subr.bf16.mxu1 %v1005_v7  ;;  %v481_v9 = vld [vmem:[%s1173_s0] sm:$0xff]  ;;  %v482_v10 = vld [vmem:[%s1173_s0 + $0x8] sm:$0xff]  ;;  %v976_v15 = vld [vmem:[%s1080_s15 + $0x18] sm:$0xff]   ;;  %v1007_v21 = vmov 0  }
  0x17   : > { %915 = vmatpush3.bf16.msra.mxu0 %v971_v6  ;;  %918 = vmatprep.mubr.msk.bf16.mxu0 %vm1006_vm1, %v1005_v7  ;;  %v973_v11 = vld [vmem:[%s1080_s15] sm:$0xff]   ;;  %v483_v12 = vpack.c.bf16 %v482_v10, %v481_v9  ;;  %v974_v13 = vld [vmem:[%s1080_s15 + $0x8] sm:$0xff]   ;;  %v979_v18 = vld [vmem:[%s1080_s15 + $0x30] sm:$0xff]  }
  0x18   : > { %916 = vmatprep.subr.bf16.mxu0 %v1005_v7  ;;  %938 = vmatprep.mubr.msk.bf16.mxu1 %vm1006_vm1, %v1005_v7  ;;  %v977_v16 = vld [vmem:[%s1080_s15 + $0x20] sm:$0xff]   ;;  %v978_v17 = vld [vmem:[%s1080_s15 + $0x28] sm:$0xff]   ;;  %v980_v19 = vld [vmem:[%s1080_s15 + $0x38] sm:$0xff]  }
  0x19   : > { %923 = vmatpush3.bf16.msra.mxu1 %v973_v11  ;;  %v665_v20 = vld [vmem:[%s1089_s21] sm:$0xff]  ;;  %969 = vset.pattern.permute.xlu0 %v1007_v21  ;;  %v666_v22 = vld [vmem:[%s1089_s21 + $0x8] sm:$0xff] }
  0x1a   : > { %924 = vmatprep.subr.bf16.mxu1 %v1005_v7  ;;  %970 = vset.pattern.permute.xlu1 %v1007_v21  ;;  %v881_v23 = vld [vmem:[%s435_s8] ss:$0 sm:$0xff]  ;;  %v664_v39 = vld [vmem:[%s1180_s7 + $0x8] sm:$0xff] }
  0x1b   : > { %917 = vmatpush3.bf16.msra.mxu0 %v972_v8  ;;  %670 = vperm.xlu0 %969, %v665_v20   ;;  %v893_v33 = vld [vmem:[%s448_s18] ss:$0 sm:$0xff] }
  0x1c   : > { %696 = vperm.xlu1 %970, %v665_v20   ;;  %v663_v35 = vld [vmem:[%s1180_s7] sm:$0xff] }
  0x1d   : > { %925 = vmatpush3.bf16.msra.mxu1 %v974_v13 }
  0x1e   : > { %919 = vmatmul.mubr.msk.bf16.vlgmr.msra.gmra.mrb[0].mxu0 %vm507_vm2, %v483_v12  ;;  %926 = vmatprep.subr.bf16.mxu1 %v1005_v7 }
  0x1f   : > { %675 = vperm.xlu0 %969, %v666_v22  }
  0x20   : > { %701 = vperm.xlu1 %970, %v666_v22  }
  0x21   : > { %927 = vmatpush3.bf16.msra.mxu1 %v975_v14 }
  0x22   : > { %928 = vmatprep.subr.bf16.mxu1 %v1005_v7 }
  0x25   : > { %929 = vmatpush3.bf16.msra.mxu1 %v976_v15 }
  0x26   : > { %930 = vmatprep.subr.bf16.mxu1 %v1005_v7 }
  0x29   : > { %931 = vmatpush3.bf16.msra.mxu1 %v977_v16 }
  0x2a   : > { %932 = vmatprep.subr.bf16.mxu1 %v1005_v7 }
  0x2d   : > { %933 = vmatpush3.bf16.msra.mxu1 %v978_v17 }
  0x2e   : > { %934 = vmatprep.subr.bf16.mxu1 %v1005_v7 }
  0x31   : > { %935 = vmatpush3.bf16.msra.mxu1 %v979_v18 }
  0x32   : > { %936 = vmatprep.subr.bf16.mxu1 %v1005_v7 }
  0x35   : > { %937 = vmatpush3.bf16.msra.mxu1 %v980_v19 }
  0x9a   : > { %v671_v34 = vpop.permute.xlu0 %670 }
  0x9b   : > { %v684_v36 = vmul.f32 %v893_v33, %v671_v34  ;;  %v697_v42 = vpop.permute.xlu1 %696 }
  0x9d   : > { %v686_v37 = vadd.f32 %v684_v36, %v663_v35 }
  0x9e   : > { %v676_v38 = vpop.permute.xlu0 %675 }
  0x9f   : > { %688 = vst.msk [vmem:[%s1180_s7] sm:$0xff] %vm507_vm2, %v686_v37  ;;  %v685_v40 = vmul.f32 %v893_v33, %v676_v38  ;;  %v702_v46 = vpop.permute.xlu1 %701 }
  0xa1   : > { %v687_v41 = vadd.f32 %v685_v40, %v664_v39 }
  0xa3   : > { %689 = vst.msk [vmem:[%s1180_s7 + $0x8] sm:$0xff] %vm507_vm2, %v687_v41 }
  0xa6   : > { %v690_v47 = vld [vmem:[%s1180_s7] sm:$0xff] }
  0xaa   : > { %v691_v52 = vld [vmem:[%s1180_s7 + $0x8] sm:$0xff] }
  0xf1   : > { %v545_v24 = vpop.f32.mrb[0].mxu0 }
  0xf2   : > { %v546_v25 = vadd.f32 %v881_v23, %v545_v24  ;;  %v920_v26 = vpop.f32.mrb[1].mxu0 }
  0xf3   : > { %v548_v27 = vpop.f32.mrb[2].mxu0 }
  0xf4   : > { %v549_v28 = vadd.f32 %v881_v23, %v548_v27  ;;  %v921_v29 = vpop.f32.mrb[3].mxu0  ;;  %v552_v30 = vmax.f32 %v546_v25, 0.0 }
  0xf6   : > { %v553_v31 = vmax.f32 %v549_v28, 0.0 }
  0xf8   : > { %v554_v32 = vpack.c.bf16 %v553_v31, %v552_v30 }
  0xfa   : > { %939 = vmatmul.mubr.bf16.vlgmr.msra.gmra.mrb[0].mxu1 %v554_v32 }
 0x1cd   : > { %v653_v43 = vpop.f32.mrb[0].mxu1 }
 0x1ce   : > { %v704_v44 = vmul.f32 %v697_v42, %v653_v43  ;;  %v940_v45 = vpop.f32.mrb[1].mxu1 }
 0x1cf   : > { %v656_v48 = vpop.f32.mrb[2].mxu1 }
 0x1d0   : > { %v706_v49 = vadd.f32 %v704_v44, %v690_v47  ;;  %v705_v50 = vmul.f32 %v702_v46, %v656_v48  ;;  %v941_v51 = vpop.f32.mrb[3].mxu1 }
 0x1d2   : > { %708 = vst.msk [vmem:[%s1180_s7] sm:$0xff] %vm507_vm2, %v706_v49  ;;  %v707_v53 = vadd.f32 %v705_v50, %v691_v52 }
 0x1d4   : > { %709 = vst.msk [vmem:[%s1180_s7 + $0x8] sm:$0xff] %vm507_vm2, %v707_v53 }
 0x1d5 PF: > { %s17_s26 = sadd.s32 1, %s1003_s26   ;;  %s1181_s24 = smov %s999_s25 }
 0x1d6   : > { %p14_p6 = scmp.ge.s32.totalorder %s17_s26, 7   ;;  %s1182_s25 = smov %s1184_s27 }
 0x1d8   :  { %16 = sbr.rel (!%p14_p6) target bundleno = 2 (0x2), region = 104 }

// kernel: fwd.31
= control target key start
LH: loop header
LB: loop body
LE: loop exit
PB: predicated region body
PF: predicated region fallthrough
CT: control target
= control target key end

     0   :  { %12 = vsyncpa [#allocation3], 0  ;;  %s1081_s24 = smov 0   ;;  %s1083_s25 = smov 0   ;;  %s1205_s0 = inlined_call_operand.vmem [shape: f32[16,32], index: 0, kind: input, shape index: {}]   ;;  %s1206_s1 = inlined_call_operand.vmem [shape: f32[16,32], index: 1, kind: input, shape index: {}]   ;;  %s1207_s2 = inlined_call_operand.vmem [shape: bf16[5,32,128], index: 2, kind: input, shape index: {}]   ;;  %s1208_s3 = inlined_call_operand.vmem [shape: f32[5,1,128], index: 3, kind: input, shape index: {}]   ;;  %s1209_s4 = inlined_call_operand.vmem [shape: bf16[5,128,32], index: 4, kind: input, shape index: {}]   ;;  %s1210_s5 = inlined_call_operand.vmem [shape: f32[5,1,32], index: 5, kind: input, shape index: {}]   ;;  %s1211_s6 = inlined_call_operand.vmem [shape: f32[5,16,1], index: 6, kind: input, shape index: {}]   ;;  %s1212_s7 = inlined_call_operand.hbm [shape: f32[16,32], index: 7, kind: output, shape index: {}]  }
   0x1   :  { %s1085_s26 = smov 0  }
   0x2 LB: > { %s859_s27 = sadd.s32 4294967295, %s1033_s26   ;;  %s33_s28 = sadd.s32 1, %s1029_s25  ;;  %s1033_s26 = sphi %s1085_s26, %s18_s26   ;;  %s1029_s25 = sphi %s1083_s25, %s1215_s25   ;;  %s1025_s24 = sphi %s1081_s24, %s1214_s24  }
   0x3   : > { %p35_p0 = scmp.ge.s32.totalorder %s33_s28, 5  ;;  %p864_p1 = scmp.ge.s32.totalorder %s1033_s26, 1 }
   0x4   : > { %p339_p2 = scmp.lt.s32.totalorder %s1033_s26, 6 }
   0x5   : > { %s1217_s28 = smov (%p35_p0, %s33_s28), 0 }
   0x6   : > { %p340_p3 = pnand %p864_p1, %p339_p2 }
   0x7   : > { %p418_p4 = scmp.lt.s32.totalorder (!%p340_p3), %s1025_s24, 4  ;;  %p457_p5 = scmp.eq.s32.totalorder (!%p340_p3), %s1025_s24, 0 }
   0x8   : > { %343 = sbr.rel (%p340_p3) target bundleno = 485 (0x1e5), region = 48 }
   0xf   : > { %s1219_s24 = smov (!%p418_p4, %s1025_s24), 4  ;;  %462 = sbr.rel (!%p457_p5) target bundleno = 22 (0x16), region = 52 }
  0x10   : > { %s889_s29 = sshll.u32 %s1219_s24, 4  ;;  %s431_s9 = scalar_lea.vmem %s1208_s3, %s1219_s24  ;;  %v463_v0 = vld [vmem:[%s1206_s1] sm:$0xff] (%p457_p5)  ;;  %vm469_vm0 = vcmask (%p457_p5), 261120   ;;  %v464_v2 = vld [vmem:[%s1206_s1 + $0x8] sm:$0xff] (%p457_p5) }
  0x11   : > { %s425_s12 = scalar_lea.vmem %s1207_s2, %s889_s29  ;;  %s890_s13 = sshll.u32 %s1219_s24, 6  ;;  %v465_v1 = vld [vmem:[%s1205_s0] sm:$0xff] (%p457_p5)  ;;  %v466_v4 = vld [vmem:[%s1205_s0 + $0x8] sm:$0xff] (%p457_p5) }
  0x12   : > { %s1114_s16 = scalar_lea.vmem %s1209_s4, %s890_s13  ;;  %s444_s19 = scalar_lea.vmem %s1210_s5, %s1219_s24  ;;  %v467_v3 = vadd.f32 (%p457_p5), %v465_v1, %v463_v0  ;;  %v468_v5 = vadd.f32 (%p457_p5), %v466_v4, %v464_v2 }
  0x13   : > { %s1123_s22 = scalar_lea.vmem %s1211_s6, %s889_s29 }
  0x14   : > { %470 = vst.msk [vmem:[#allocation2] sm:$0xff] (%p457_p5), %vm469_vm0, %v467_v3  ;;  %471 = vst.msk [vmem:[#allocation2 + $0x8] sm:$0xff] (%p457_p5), %vm469_vm0, %v468_v5 }
  0x16 PF: > { %v971_v6 = vld [vmem:[%s425_s12] sm:$0xff]   ;;  %v1035_v7 = vmov 0.0   ;;  %v972_v8 = vld [vmem:[%s425_s12 + $0x8] sm:$0xff]   ;;  %vm1036_vm1 = vmmov 0   ;;  %vm498_vm2 = vcmask 261120   ;;  %v975_v14 = vld [vmem:[%s1114_s16 + $0x10] sm:$0xff]  }
  0x17   : > { %905 = vmatprep.subr.bf16.mxu0 %v1035_v7  ;;  %913 = vmatprep.subr.bf16.mxu1 %v1035_v7  ;;  %v472_v9 = vld [vmem:[%s1205_s0] sm:$0xff]  ;;  %v473_v10 = vld [vmem:[%s1205_s0 + $0x8] sm:$0xff]  ;;  %v976_v15 = vld [vmem:[%s1114_s16 + $0x18] sm:$0xff]   ;;  %v1037_v21 = vmov 0   ;;  %s1038_s24 = smov [#allocation2]   ;;  %p1168_p6 = scmp.eq.s32.totalorder %s859_s27, 4 }
  0x18   : > { %906 = vmatpush3.bf16.msra.mxu0 %v971_v6  ;;  %909 = vmatprep.mubr.msk.bf16.mxu0 %vm1036_vm1, %v1035_v7  ;;  %v973_v11 = vld [vmem:[%s1114_s16] sm:$0xff]   ;;  %v474_v12 = vpack.c.bf16 %v473_v10, %v472_v9  ;;  %v974_v13 = vld [vmem:[%s1114_s16 + $0x8] sm:$0xff]   ;;  %v979_v18 = vld [vmem:[%s1114_s16 + $0x30] sm:$0xff]  }
  0x19   : > { %907 = vmatprep.subr.bf16.mxu0 %v1035_v7  ;;  %929 = vmatprep.mubr.msk.bf16.mxu1 %vm1036_vm1, %v1035_v7  ;;  %v977_v16 = vld [vmem:[%s1114_s16 + $0x20] sm:$0xff]   ;;  %v978_v17 = vld [vmem:[%s1114_s16 + $0x28] sm:$0xff]   ;;  %v980_v19 = vld [vmem:[%s1114_s16 + $0x38] sm:$0xff]  }
  0x1a   : > { %914 = vmatpush3.bf16.msra.mxu1 %v973_v11  ;;  %v656_v20 = vld [vmem:[%s1123_s22] sm:$0xff]  ;;  %969 = vset.pattern.permute.xlu0 %v1037_v21  ;;  %v657_v22 = vld [vmem:[%s1123_s22 + $0x8] sm:$0xff] }
  0x1b   : > { %915 = vmatprep.subr.bf16.mxu1 %v1035_v7  ;;  %970 = vset.pattern.permute.xlu1 %v1037_v21  ;;  %v872_v23 = vld [vmem:[%s431_s9] ss:$0 sm:$0xff]  ;;  %v655_v39 = vld [vmem:[#allocation2 + $0x8] sm:$0xff]  ;;  %s710_s9 = sshll.u32 %s1038_s24, 4  ;;  %s711_s9 = int_to_ptr.vmem [resolvable:$true] %s710_s9 }
  0x1c   : > { %908 = vmatpush3.bf16.msra.mxu0 %v972_v8  ;;  %661 = vperm.xlu0 %969, %v656_v20   ;;  %v884_v33 = vld [vmem:[%s444_s19] ss:$0 sm:$0xff]  ;;  %s981_s22 = scalar_lea.vmem %s711_s9, 256  ;;  %p988_p10 = scmp.lt.s32.totalorder %s711_s9, %s711_s9 }
  0x1d   : > { %687 = vperm.xlu1 %970, %v656_v20   ;;  %v654_v35 = vld [vmem:[#allocation2] sm:$0xff]  ;;  %p982_p7 = scmp.ne.s32.totalorder %s711_s9, %s981_s22  ;;  %p989_p11 = scmp.lt.s32.totalorder %s981_s22, %s981_s22 }
  0x1e   : > { %916 = vmatpush3.bf16.msra.mxu1 %v974_v13 }
  0x1f   : > { %910 = vmatmul.mubr.msk.bf16.vlgmr.msra.gmra.mrb[0].mxu0 %vm498_vm2, %v474_v12  ;;  %917 = vmatprep.subr.bf16.mxu1 %v1035_v7  ;;  %p983_p8 = pnand %p982_p7, %p1168_p6  ;;  %p990_p12 = por %p989_p11, %p988_p10 }
  0x20   : > { %666 = vperm.xlu0 %969, %v657_v22  }
  0x21   : > { %692 = vperm.xlu1 %970, %v657_v22   ;;  %p984_p9 = pneg %p983_p8 }
  0x22   : > { %918 = vmatpush3.bf16.msra.mxu1 %v975_v14 }
  0x23   : > { %919 = vmatprep.subr.bf16.mxu1 %v1035_v7  ;;  %p991_p13 = pnand %p990_p12, %p984_p9 }
  0x26   : > { %920 = vmatpush3.bf16.msra.mxu1 %v976_v15 }
  0x27   : > { %921 = vmatprep.subr.bf16.mxu1 %v1035_v7 }
  0x2a   : > { %922 = vmatpush3.bf16.msra.mxu1 %v977_v16 }
  0x2b   : > { %923 = vmatprep.subr.bf16.mxu1 %v1035_v7 }
  0x2e   : > { %924 = vmatpush3.bf16.msra.mxu1 %v978_v17 }
  0x2f   : > { %925 = vmatprep.subr.bf16.mxu1 %v1035_v7 }
  0x32   : > { %926 = vmatpush3.bf16.msra.mxu1 %v979_v18 }
  0x33   : > { %927 = vmatprep.subr.bf16.mxu1 %v1035_v7 }
  0x36   : > { %928 = vmatpush3.bf16.msra.mxu1 %v980_v19 }
  0x9b   : > { %v662_v34 = vpop.permute.xlu0 %661 }
  0x9c   : > { %v675_v36 = vmul.f32 %v884_v33, %v662_v34  ;;  %v688_v42 = vpop.permute.xlu1 %687 }
  0x9e   : > { %v677_v37 = vadd.f32 %v675_v36, %v654_v35 }
  0x9f   : > { %v667_v38 = vpop.permute.xlu0 %666 }
  0xa0   : > { %679 = vst.msk [vmem:[#allocation2] sm:$0xff] %vm498_vm2, %v677_v37  ;;  %v676_v40 = vmul.f32 %v884_v33, %v667_v38  ;;  %v693_v46 = vpop.permute.xlu1 %692 }
  0xa2   : > { %v678_v41 = vadd.f32 %v676_v40, %v655_v39 }
  0xa4   : > { %680 = vst.msk [vmem:[#allocation2 + $0x8] sm:$0xff] %vm498_vm2, %v678_v41 }
  0xa7   : > { %v681_v47 = vld [vmem:[#allocation2] sm:$0xff] }
  0xab   : > { %v682_v52 = vld [vmem:[#allocation2 + $0x8] sm:$0xff] }
  0xf2   : > { %v536_v24 = vpop.f32.mrb[0].mxu0 }
  0xf3   : > { %v537_v25 = vadd.f32 %v872_v23, %v536_v24  ;;  %v911_v26 = vpop.f32.mrb[1].mxu0 }
  0xf4   : > { %v539_v27 = vpop.f32.mrb[2].mxu0 }
  0xf5   : > { %v540_v28 = vadd.f32 %v872_v23, %v539_v27  ;;  %v912_v29 = vpop.f32.mrb[3].mxu0  ;;  %v543_v30 = vmax.f32 %v537_v25, 0.0 }
  0xf7   : > { %v544_v31 = vmax.f32 %v540_v28, 0.0 }
  0xf9   : > { %v545_v32 = vpack.c.bf16 %v544_v31, %v543_v30 }
  0xfb   : > { %930 = vmatmul.mubr.bf16.vlgmr.msra.gmra.mrb[0].mxu1 %v545_v32 }
 0x1ce   : > { %v644_v43 = vpop.f32.mrb[0].mxu1 }
 0x1cf   : > { %v695_v44 = vmul.f32 %v688_v42, %v644_v43  ;;  %v931_v45 = vpop.f32.mrb[1].mxu1 }
 0x1d0   : > { %v647_v48 = vpop.f32.mrb[2].mxu1 }
 0x1d1   : > { %v697_v49 = vadd.f32 %v695_v44, %v681_v47  ;;  %v696_v50 = vmul.f32 %v693_v46, %v647_v48  ;;  %v932_v51 = vpop.f32.mrb[3].mxu1 }
 0x1d3   : > { %699 = vst.msk [vmem:[#allocation2] sm:$0xff] %vm498_vm2, %v697_v49  ;;  %v698_v53 = vadd.f32 %v696_v50, %v682_v52 }
 0x1d5   : > { %700 = vst.msk [vmem:[#allocation2 + $0x8] sm:$0xff] %vm498_vm2, %v698_v53 }
 0x1d6   : > { %994 = shalt.err (!%p991_p13)
}
 0x1d7   : > { %s995_s8 = scalar_lea.hbm %s1212_s7, 256 }
 0x1d8   : > { %p996_p0 = scmp.ne.s32.totalorder %s1212_s7, %s995_s8  ;;  %p1001_p3 = scmp.lt.u32.totalorder %s995_s8, %s1212_s7 }
 0x1da   : > { %p997_p1 = pnand %p996_p0, %p1168_p6 }
 0x1dc   : > { %p998_p2 = pneg %p997_p1 }
 0x1de   : > { %p1003_p4 = pnand %p1001_p3, %p998_p2 }
 0x1e0   : > { %1006 = shalt.err (!%p1003_p4)
}
 0x1e1   : > { %s1039_s15 = smov 128   ;;  %s1040_s29 = smov 8  }
 0x1e2   : > { %934 = dma.vmem_to_hbm [thread:$0]  (%p1168_p6), %s711_s9, 256, %s1212_s7, [#allocation3], %s1039_s15, %s1039_s15, %s1040_s29  }
 0x1e3   : > { %1020 = dma.done.wait (%p1168_p6), [#allocation3], 256  }
 0x1e4   : > { %1022 = vsyncadd (%p1168_p6), [#allocation3], 4294967040 }
 0x1e5 PF: > { %s18_s26 = sadd.s32 1, %s1033_s26   ;;  %s1214_s24 = smov %s1029_s25 }
 0x1e6   : > { %p15_p5 = scmp.ge.s32.totalorder %s18_s26, 7   ;;  %s1215_s25 = smov %s1217_s28 }
 0x1e8   :  { %17 = sbr.rel (!%p15_p5) target bundleno = 2 (0x2), region = 102 }
 0x1ef   :  { %726 = vsyncpa [#allocation3], 1 }
 0x1f0   :  { %728 = vsyncpa [#allocation3 + $0x1], 1 }

</bundles_post_ra>
